<compile_context>
chip_gen: v7x
topology: tpu7x:2x2x1
jax: 0.10.0
libtpu: 0.0.40
codegen_flags: <defaults>
</compile_context>

<pallas_src>
import functools
import math

import jax
import jax.numpy as jnp
from jax.experimental import pallas as pl
from jax.experimental.pallas import tpu as pltpu


# --------------------------------------------------------------------------- #
# In-kernel multi-head self-attention on a (TB, S, E) activation block.
# Weight refs are bf16 (E, E) in (in, out) layout; bq/bo are f32 (1, E).
# The 1/sqrt(d) scale is folded into wq/bq; the key bias is dropped and the
# value bias is folded into bo on the host.
# --------------------------------------------------------------------------- #
def _mha_block(x, wq_ref, wk_ref, wv_ref, bq_ref, wo_ref, bo_ref,
               mask, ctx_ref, num_heads):
    TB, S, E = x.shape
    d = E // num_heads

    xb = x.reshape(TB * S, E).astype(jnp.bfloat16)
    q = jnp.dot(xb, wq_ref[...], preferred_element_type=jnp.float32) + bq_ref[...]
    k = jnp.dot(xb, wk_ref[...], preferred_element_type=jnp.float32)
    v = jnp.dot(xb, wv_ref[...], preferred_element_type=jnp.float32)

    mask_b = None
    if mask is not None:
        # Hoisted: JAX does not CSE broadcast_in_dim -> broadcast once, not per head.
        mask_b = jnp.broadcast_to(mask[None, :, :], (TB, S, S))

    # Per-head scores/softmax/context, batched over TB.  Each head's context is
    # written into the shared (TB*S, E) bf16 VMEM scratch so the output
    # projection is ONE full-K=E matmul and no concatenate/relayout is needed.
    for h in range(num_heads):
        sl = slice(h * d, (h + 1) * d)
        qh = q[:, sl].reshape(TB, S, d).astype(jnp.bfloat16)
        kh = k[:, sl].reshape(TB, S, d).astype(jnp.bfloat16)
        vh = v[:, sl].reshape(TB, S, d).astype(jnp.bfloat16)

        s = jnp.einsum("bqd,bkd->bqk", qh, kh,
                       preferred_element_type=jnp.float32)            # (TB, S, S)
        if mask_b is not None:
            s = s + mask_b
        s = s - jnp.max(s, axis=-1, keepdims=True)
        p = jnp.exp(s)
        p = p * pl.reciprocal(jnp.sum(p, axis=-1, keepdims=True), approx=True)
        ctx = jnp.einsum("bqk,bkd->bqd", p.astype(jnp.bfloat16), vh,
                         preferred_element_type=jnp.float32)           # (TB, S, d)
        ctx_ref[:, sl] = ctx.reshape(TB * S, d).astype(jnp.bfloat16)

    out = (jnp.dot(ctx_ref[...], wo_ref[...], preferred_element_type=jnp.float32)
           + bo_ref[...])
    return out.reshape(TB, S, E)


def _dst_attention_kernel(*refs, num_heads, use_time_attention, has_mask, eps):
    if use_time_attention:
        if has_mask:
            x_ref, mask_ref, *rest = refs
        else:
            x_ref, *rest = refs
            mask_ref = None
        (wtq, wtk, wtv, btq, wto, bto,
         wsq, wsk, wsv, bsq, wso, bso,
         lnw, lnb, o_ref, ctx_ref) = rest
    else:
        x_ref, lnw, lnb, o_ref = refs
        ctx_ref = None

    x = x_ref[...].astype(jnp.float32)                                 # (TB, S, E)
    TB, S, E = x.shape

    if use_time_attention:
        mask = mask_ref[...] if has_mask else None
        # --- time attention (residual) ---
        x = x + _mha_block(x, wtq, wtk, wtv, btq, wto, bto,
                           mask, ctx_ref, num_heads)
        # --- spatial attention (spatial_proj fused into its QKV weights on host,
        #     no mask, residual) ---
        x = x + _mha_block(x, wsq, wsk, wsv, bsq, wso, bso,
                           None, ctx_ref, num_heads)

    # --- LayerNorm over embed dim (PyTorch: biased variance, eps=1e-5) ---
    mu = jnp.mean(x, axis=-1, keepdims=True)
    xc = x - mu
    var = jnp.mean(xc * xc, axis=-1, keepdims=True)
    y = xc * jax.lax.rsqrt(var + eps)
    o_ref[...] = (y * lnw[...] + lnb[...]).astype(o_ref.dtype)


# --------------------------------------------------------------------------- #
# Host-side parameter prep (all folding in f32, then cast weights to bf16):
#   * split in_proj into q/k/v, transpose to (in, out) layout
#   * fold the 1/sqrt(d) softmax scale into wq/bq
#   * drop the key bias (constant per query row -> cancels in softmax)
#   * fold the value bias into the output-projection bias (rows of p sum to 1)
#   * fuse spatial_proj (x @ Wsp.T + bsp) into the spatial attention's QKV
# --------------------------------------------------------------------------- #
def _prepare_kernel_params(params, num_heads):
    E = params["norm"]["weight"].shape[0]
    d = E // num_heads
    scale = 1.0 / math.sqrt(d)

    def split_attn(p, pre_w=None, pre_b=None):
        w_in, b_in = p["in_proj_weight"], p["in_proj_bias"]            # (3E,E),(3E,)
        wq, wk, wv = w_in[:E].T, w_in[E:2 * E].T, w_in[2 * E:].T        # (in, out)
        bq, bk, bv = b_in[:E], b_in[E:2 * E], b_in[2 * E:]
        wo = p["out_proj_weight"].T                                     # (in, out)
        bo = p["out_proj_bias"]

        if pre_w is not None:
            # x_space = x @ pre_w + pre_b ; fuse into each of q/k/v.
            bq = pre_b @ wq + bq
            bv = pre_b @ wv + bv
            # (key bias is dropped below, no need to fuse it)
            wq = pre_w @ wq
            wk = pre_w @ wk
            wv = pre_w @ wv

        # Fold softmax scale into the q projection.
        wq = wq * scale
        bq = bq * scale
        # Value bias folds into the output-projection bias; key bias dropped.
        bo = bv @ wo + bo

        return {
            "wq": wq.astype(jnp.bfloat16),
            "wk": wk.astype(jnp.bfloat16),
            "wv": wv.astype(jnp.bfloat16),
            "bq": bq.reshape(1, E).astype(jnp.float32),
            "wo": wo.astype(jnp.bfloat16),
            "bo": bo.reshape(1, E).astype(jnp.float32),
        }

    return {
        "time": split_attn(params["time"]),
        "spatial": split_attn(params["spatial"],
                              pre_w=params["proj"]["weight"].T,
                              pre_b=params["proj"]["bias"]),
        "lnw": params["norm"]["weight"].reshape(1, E).astype(jnp.float32),
        "lnb": params["norm"]["bias"].reshape(1, E).astype(jnp.float32),
    }


# --------------------------------------------------------------------------- #
# TB (batch-tile) selection: VMEM-budget aware and capped at B//2 so the batch
# grid has >= 2 parallel steps (keeps both v7x TensorCores busy; harmless on
# the single-TC v5e/v6e).
# --------------------------------------------------------------------------- #
def _pick_tb(B, S, E, has_attention, vmem_cap, weight_bytes):
    headroom = 8 << 20
    budget = max(4 << 20, vmem_cap - weight_bytes - headroom)

    def working_set(tb):
        blocks = 2 * (2 * tb * S * E * 4)          # x + out, double-buffered f32
        if not has_attention:
            return blocks + tb * S * E * 4          # one live f32 copy
        qkv = 3 * tb * S * E * 4                    # q, k, v (f32)
        ctx = tb * S * E * 2                        # bf16 scratch
        scores = 2 * tb * S * S * 4                 # s and p per head (f32)
        live_x = 2 * tb * S * E * 4                 # x + residual temp
        return blocks + qkv + ctx + scores + live_x

    tb_cap = B // 2 if B >= 2 else 1
    best = 1
    for cand in range(1, B + 1):
        if B % cand or cand > tb_cap:
            continue
        if working_set(cand) <= budget:
            best = cand
    return best


def _const_spec(arr):
    """Constant (grid-invariant) operand: fetched once, single-buffered."""
    zeros = (0,) * arr.ndim
    return pl.BlockSpec(arr.shape, lambda b: zeros,
                        pipeline_mode=pl.Buffered(1))


# --------------------------------------------------------------------------- #
# Wrapper
# --------------------------------------------------------------------------- #
def divided_space_time_attention(x, mask, params, *, num_heads,
                                 use_time_attention=True):
    B, S, E = x.shape
    assert E % num_heads == 0
    x = x.astype(jnp.float32)

    kp = _prepare_kernel_params(params, num_heads)
    has_mask = (mask is not None) and use_time_attention

    # Per-chip VMEM capacity (v7x: 64 MiB, v5e/v6e: 128 MiB).
    try:
        vmem_cap = int(pltpu.get_tpu_info().vmem_capacity_bytes)
    except Exception:
        vmem_cap = 64 * 2**20        # conservative (v7x-sized) fallback

    if use_time_attention:
        weight_bytes = 8 * E * E * 2 + 4 * E * 4 + 2 * E * 4   # bf16 W + f32 biases/LN
        if has_mask:
            weight_bytes += S * S * 4
    else:
        weight_bytes = 2 * E * 4

    TB = _pick_tb(B, S, E, use_time_attention, vmem_cap, weight_bytes)

    operands, in_specs = [], []

    def add(arr, spec):
        operands.append(arr)
        in_specs.append(spec)

    add(x, pl.BlockSpec((TB, S, E), lambda b: (b, 0, 0)))
    if use_time_attention:
        if has_mask:
            m = jnp.asarray(mask, jnp.float32)
            add(m, _const_spec(m))
        for part in ("time", "spatial"):
            for key in ("wq", "wk", "wv", "bq", "wo", "bo"):
                add(kp[part][key], _const_spec(kp[part][key]))
    add(kp["lnw"], _const_spec(kp["lnw"]))
    add(kp["lnb"], _const_spec(kp["lnb"]))

    scratch_shapes = []
    if use_time_attention:
        scratch_shapes.append(pltpu.VMEM((TB * S, E), jnp.bfloat16))   # ctx scratch

    kernel = functools.partial(_dst_attention_kernel,
                               num_heads=num_heads,
                               use_time_attention=use_time_attention,
                               has_mask=has_mask,
                               eps=1e-5)

    # Honest per-chip budget: capacity minus headroom (never above physical VMEM).
    vmem_limit = max(32 * 2**20, vmem_cap - (8 * 2**20))

    return pl.pallas_call(
        kernel,
        out_shape=jax.ShapeDtypeStruct((B, S, E), jnp.float32),
        grid_spec=pltpu.PrefetchScalarGridSpec(
            num_scalar_prefetch=0,
            grid=(B // TB,),
            in_specs=in_specs,
            out_specs=pl.BlockSpec((TB, S, E), lambda b: (b, 0, 0)),
            scratch_shapes=scratch_shapes,
        ),
        compiler_params=pltpu.CompilerParams(
            dimension_semantics=("parallel",),
            vmem_limit_bytes=vmem_limit),
    )(*operands)


# --------------------------------------------------------------------------- #
# Pure-JAX f32 reference (mirrors the PyTorch forward) for verification.
# --------------------------------------------------------------------------- #
def _reference(x, mask, params, *, num_heads, use_time_attention=True):
    B, S, E = x.shape
    d = E // num_heads

    def mha(xb, p, m):
        qkv = xb @ p["in_proj_weight"].T + p["in_proj_bias"]
        q = qkv[..., :E] / math.sqrt(d)
        k = qkv[..., E:2 * E]
        v = qkv[..., 2 * E:]
        q = q.reshape(B, S, num_heads, d)
        k = k.reshape(B, S, num_heads, d)
        v = v.reshape(B, S, num_heads, d)
        s = jnp.einsum("bqhd,bkhd->bhqk", q, k)
        if m is not None:
            s = s + m
        pr = jax.nn.softmax(s, axis=-1)
        o = jnp.einsum("bhqk,bkhd->bqhd", pr, v).reshape(B, S, E)
        return o @ p["out_proj_weight"].T + p["out_proj_bias"]

    if use_time_attention:
        x = x + mha(x, params["time"], mask)
        xs = x @ params["proj"]["weight"].T + params["proj"]["bias"]
        x = x + mha(xs, params["spatial"], None)
    mu = x.mean(-1, keepdims=True)
    var = ((x - mu) ** 2).mean(-1, keepdims=True)
    y = (x - mu) / jnp.sqrt(var + 1e-5)
    return y * params["norm"]["weight"] + params["norm"]["bias"]


def _init_params(key, embed_dim):
    E = embed_dim
    ks = jax.random.split(key, 10)
    a = 1.0 / math.sqrt(E)
    u = lambda k, shape: jax.random.uniform(k, shape, jnp.float32, -a, a)

    def attn(k0, k1, k2, k3):
        return {"in_proj_weight": u(k0, (3 * E, E)),
                "in_proj_bias": u(k1, (3 * E,)),
                "out_proj_weight": u(k2, (E, E)),
                "out_proj_bias": u(k3, (E,))}

    return {
        "time": attn(ks[0], ks[1], ks[2], ks[3]),
        "spatial": attn(ks[4], ks[5], ks[6], ks[7]),
        "proj": {"weight": u(ks[8], (E, E)), "bias": u(ks[9], (E,))},
        "norm": {"weight": jnp.ones((E,), jnp.float32),
                 "bias": jnp.zeros((E,), jnp.float32)},
    }


if __name__ == "__main__":
    B, S, E, H = 4, 8, 128, 4   # E multiple of 128 -> lane-dense stores
    key = jax.random.PRNGKey(0)
    kx, kp, km = jax.random.split(key, 3)
    x = jax.random.normal(kx, (B, S, E), jnp.float32)
    params = _init_params(kp, E)

    # 1) main path: time + spatial attention, no mask (matches the PyTorch call).
    out = jax.block_until_ready(
        divided_space_time_attention(x, None, params, num_heads=H,
                                     use_time_attention=True))
    ref = _reference(x, None, params, num_heads=H, use_time_attention=True)
    assert out.shape == (B, S, E)
    err = float(jnp.max(jnp.abs(out - ref)))
    assert err < 5e-2, f"no-mask path max abs err {err}"   # bf16 MXU tolerance

    # 2) additive attention mask on the time attention.
    mask = jax.random.uniform(km, (S, S), jnp.float32, -1.0, 1.0)
    out_m = jax.block_until_ready(
        divided_space_time_attention(x, mask, params, num_heads=H,
                                     use_time_attention=True))
    ref_m = _reference(x, mask, params, num_heads=H, use_time_attention=True)
    err_m = float(jnp.max(jnp.abs(out_m - ref_m)))
    assert err_m < 5e-2, f"mask path max abs err {err_m}"

    # 3) use_time_attention=False -> LayerNorm only (exact f32 path, no weight DMA).
    out_ln = jax.block_until_ready(
        divided_space_time_attention(x, None, params, num_heads=H,
                                     use_time_attention=False))
    ref_ln = _reference(x, None, params, num_heads=H, use_time_attention=False)
    err_ln = float(jnp.max(jnp.abs(out_ln - ref_ln)))
    assert err_ln < 1e-5, f"layernorm-only path max abs err {err_ln}"

    print("KERNEL_OK")
</pallas_src>

<mosaic_0001>
module attributes {stable_mosaic.version = 11 : i64} {
  func.func @_dst_attention_kernel(%arg0: i32, %arg1: memref<2x8x128xf32, #tpu.memory_space<vmem>>, %arg2: memref<128x128xbf16, #tpu.memory_space<vmem>>, %arg3: memref<128x128xbf16, #tpu.memory_space<vmem>>, %arg4: memref<128x128xbf16, #tpu.memory_space<vmem>>, %arg5: memref<1x128xf32, #tpu.memory_space<vmem>>, %arg6: memref<128x128xbf16, #tpu.memory_space<vmem>>, %arg7: memref<1x128xf32, #tpu.memory_space<vmem>>, %arg8: memref<128x128xbf16, #tpu.memory_space<vmem>>, %arg9: memref<128x128xbf16, #tpu.memory_space<vmem>>, %arg10: memref<128x128xbf16, #tpu.memory_space<vmem>>, %arg11: memref<1x128xf32, #tpu.memory_space<vmem>>, %arg12: memref<128x128xbf16, #tpu.memory_space<vmem>>, %arg13: memref<1x128xf32, #tpu.memory_space<vmem>>, %arg14: memref<1x128xf32, #tpu.memory_space<vmem>>, %arg15: memref<1x128xf32, #tpu.memory_space<vmem>>, %arg16: memref<2x8x128xf32, #tpu.memory_space<vmem>>, %arg17: memref<16x128xbf16, #tpu.memory_space<vmem>>) attributes {dimension_semantics = [#tpu.dimension_semantics<parallel>], iteration_bounds = array<i64: 2>, scalar_prefetch = 0 : i64, scratch_operands = 1 : i64, tpu.core_type = #tpu.core_type<tc>, window_params = [{transform_indices = @transform_0, window_bounds = array<i64: 2, 8, 128>}, {pipeline_mode = #tpu.pipeline_mode<synchronous>, transform_indices = @transform_1, window_bounds = array<i64: 128, 128>}, {pipeline_mode = #tpu.pipeline_mode<synchronous>, transform_indices = @transform_2, window_bounds = array<i64: 128, 128>}, {pipeline_mode = #tpu.pipeline_mode<synchronous>, transform_indices = @transform_3, window_bounds = array<i64: 128, 128>}, {pipeline_mode = #tpu.pipeline_mode<synchronous>, transform_indices = @transform_4, window_bounds = array<i64: 1, 128>}, {pipeline_mode = #tpu.pipeline_mode<synchronous>, transform_indices = @transform_5, window_bounds = array<i64: 128, 128>}, {pipeline_mode = #tpu.pipeline_mode<synchronous>, transform_indices = @transform_6, window_bounds = array<i64: 1, 128>}, {pipeline_mode = #tpu.pipeline_mode<synchronous>, transform_indices = @transform_7, window_bounds = array<i64: 128, 128>}, {pipeline_mode = #tpu.pipeline_mode<synchronous>, transform_indices = @transform_8, window_bounds = array<i64: 128, 128>}, {pipeline_mode = #tpu.pipeline_mode<synchronous>, transform_indices = @transform_9, window_bounds = array<i64: 128, 128>}, {pipeline_mode = #tpu.pipeline_mode<synchronous>, transform_indices = @transform_10, window_bounds = array<i64: 1, 128>}, {pipeline_mode = #tpu.pipeline_mode<synchronous>, transform_indices = @transform_11, window_bounds = array<i64: 128, 128>}, {pipeline_mode = #tpu.pipeline_mode<synchronous>, transform_indices = @transform_12, window_bounds = array<i64: 1, 128>}, {pipeline_mode = #tpu.pipeline_mode<synchronous>, transform_indices = @transform_13, window_bounds = array<i64: 1, 128>}, {pipeline_mode = #tpu.pipeline_mode<synchronous>, transform_indices = @transform_14, window_bounds = array<i64: 1, 128>}, {transform_indices = @transform_15, window_bounds = array<i64: 2, 8, 128>}]} {
    %c0 = arith.constant 0 : index
    %c0_0 = arith.constant 0 : index
    %c0_1 = arith.constant 0 : index
    %0 = vector.load %arg1[%c0, %c0_0, %c0_1] : memref<2x8x128xf32, #tpu.memory_space<vmem>>, vector<2x8x128xf32>
    %1 = vector.shape_cast %0 : vector<2x8x128xf32> to vector<16x128xf32>
    %2 = arith.truncf %1 : vector<16x128xf32> to vector<16x128xbf16>
    %c0_2 = arith.constant 0 : index
    %c0_3 = arith.constant 0 : index
    %3 = vector.load %arg2[%c0_2, %c0_3] : memref<128x128xbf16, #tpu.memory_space<vmem>>, vector<128x128xbf16>
    %cst = arith.constant dense<0.000000e+00> : vector<16x128xf32>
    %4 = tpu.matmul %2, %3, %cst {dimension_numbers = #tpu.dot_dimension_numbers<[1], [0], [0], [1], [0, 0, 1, 1], [], []>} : vector<16x128xbf16>, vector<128x128xbf16>, vector<16x128xf32> -> vector<16x128xf32>
    %c0_4 = arith.constant 0 : index
    %c0_5 = arith.constant 0 : index
    %5 = vector.load %arg5[%c0_4, %c0_5] : memref<1x128xf32, #tpu.memory_space<vmem>>, vector<1x128xf32>
    %6 = vector.broadcast %5 : vector<1x128xf32> to vector<16x128xf32>
    %7 = arith.addf %4, %6 : vector<16x128xf32>
    %c0_6 = arith.constant 0 : index
    %c0_7 = arith.constant 0 : index
    %8 = vector.load %arg3[%c0_6, %c0_7] : memref<128x128xbf16, #tpu.memory_space<vmem>>, vector<128x128xbf16>
    %cst_8 = arith.constant dense<0.000000e+00> : vector<16x128xf32>
    %9 = tpu.matmul %2, %8, %cst_8 {dimension_numbers = #tpu.dot_dimension_numbers<[1], [0], [0], [1], [0, 0, 1, 1], [], []>} : vector<16x128xbf16>, vector<128x128xbf16>, vector<16x128xf32> -> vector<16x128xf32>
    %c0_9 = arith.constant 0 : index
    %c0_10 = arith.constant 0 : index
    %10 = vector.load %arg4[%c0_9, %c0_10] : memref<128x128xbf16, #tpu.memory_space<vmem>>, vector<128x128xbf16>
    %cst_11 = arith.constant dense<0.000000e+00> : vector<16x128xf32>
    %11 = tpu.matmul %2, %10, %cst_11 {dimension_numbers = #tpu.dot_dimension_numbers<[1], [0], [0], [1], [0, 0, 1, 1], [], []>} : vector<16x128xbf16>, vector<128x128xbf16>, vector<16x128xf32> -> vector<16x128xf32>
    %12 = vector.extract_strided_slice %7 {offsets = [0, 0], sizes = [16, 32], strides = [1, 1]} : vector<16x128xf32> to vector<16x32xf32>
    %13 = vector.shape_cast %12 : vector<16x32xf32> to vector<2x8x32xf32>
    %14 = arith.truncf %13 : vector<2x8x32xf32> to vector<2x8x32xbf16>
    %15 = vector.extract_strided_slice %9 {offsets = [0, 0], sizes = [16, 32], strides = [1, 1]} : vector<16x128xf32> to vector<16x32xf32>
    %16 = vector.shape_cast %15 : vector<16x32xf32> to vector<2x8x32xf32>
    %17 = arith.truncf %16 : vector<2x8x32xf32> to vector<2x8x32xbf16>
    %18 = vector.extract_strided_slice %11 {offsets = [0, 0], sizes = [16, 32], strides = [1, 1]} : vector<16x128xf32> to vector<16x32xf32>
    %19 = vector.shape_cast %18 : vector<16x32xf32> to vector<2x8x32xf32>
    %20 = arith.truncf %19 : vector<2x8x32xf32> to vector<2x8x32xbf16>
    "tpu.trace_start"() <{level = 10 : i32, message = "bqd,bkd->bqk"}> : () -> ()
    %cst_12 = arith.constant dense<0.000000e+00> : vector<2x8x8xf32>
    %21 = tpu.matmul %14, %17, %cst_12 {dimension_numbers = #tpu.dot_dimension_numbers<[2], [2], [1], [1], [0, 0, 0, 1, 1, 1], [0], [0]>} : vector<2x8x32xbf16>, vector<2x8x32xbf16>, vector<2x8x8xf32> -> vector<2x8x8xf32>
    "tpu.trace_stop"() : () -> ()
    %cst_13 = arith.constant dense<0xFF800000> : vector<2x8xf32>
    %22 = vector.multi_reduction <maximumf>, %21, %cst_13 [2] : vector<2x8x8xf32> to vector<2x8xf32>
    %23 = vector.shape_cast %22 : vector<2x8xf32> to vector<2x8x1xf32>
    %24 = vector.broadcast %23 : vector<2x8x1xf32> to vector<2x8x8xf32>
    %25 = arith.subf %21, %24 : vector<2x8x8xf32>
    %26 = math.exp %25 : vector<2x8x8xf32>
    %cst_14 = arith.constant dense<0.000000e+00> : vector<2x8xf32>
    %27 = vector.multi_reduction <add>, %26, %cst_14 [2] : vector<2x8x8xf32> to vector<2x8xf32>
    %28 = vector.shape_cast %27 : vector<2x8xf32> to vector<2x8x1xf32>
    %29 = tpu.reciprocal %28 {approx = true} : vector<2x8x1xf32> -> vector<2x8x1xf32>
    %30 = vector.broadcast %29 : vector<2x8x1xf32> to vector<2x8x8xf32>
    %31 = arith.mulf %26, %30 : vector<2x8x8xf32>
    %32 = arith.truncf %31 : vector<2x8x8xf32> to vector<2x8x8xbf16>
    "tpu.trace_start"() <{level = 10 : i32, message = "bqk,bkd->bqd"}> : () -> ()
    %cst_15 = arith.constant dense<0.000000e+00> : vector<2x8x32xf32>
    %33 = tpu.matmul %32, %20, %cst_15 {dimension_numbers = #tpu.dot_dimension_numbers<[2], [1], [1], [2], [0, 0, 0, 1, 1, 2], [0], [0]>} : vector<2x8x8xbf16>, vector<2x8x32xbf16>, vector<2x8x32xf32> -> vector<2x8x32xf32>
    "tpu.trace_stop"() : () -> ()
    %34 = vector.shape_cast %33 : vector<2x8x32xf32> to vector<16x32xf32>
    %35 = arith.truncf %34 : vector<16x32xf32> to vector<16x32xbf16>
    %c0_16 = arith.constant 0 : index
    %c0_17 = arith.constant 0 : index
    %36 = vector.load %arg17[%c0_16, %c0_17] : memref<16x128xbf16, #tpu.memory_space<vmem>>, vector<16x32xbf16>
    tpu.vector_store %arg17[%c0_16, %c0_17], %35 {strides = array<i32>} : memref<16x128xbf16, #tpu.memory_space<vmem>>, vector<16x32xbf16>,
    %37 = vector.extract_strided_slice %7 {offsets = [0, 32], sizes = [16, 32], strides = [1, 1]} : vector<16x128xf32> to vector<16x32xf32>
    %38 = vector.shape_cast %37 : vector<16x32xf32> to vector<2x8x32xf32>
    %39 = arith.truncf %38 : vector<2x8x32xf32> to vector<2x8x32xbf16>
    %40 = vector.extract_strided_slice %9 {offsets = [0, 32], sizes = [16, 32], strides = [1, 1]} : vector<16x128xf32> to vector<16x32xf32>
    %41 = vector.shape_cast %40 : vector<16x32xf32> to vector<2x8x32xf32>
    %42 = arith.truncf %41 : vector<2x8x32xf32> to vector<2x8x32xbf16>
    %43 = vector.extract_strided_slice %11 {offsets = [0, 32], sizes = [16, 32], strides = [1, 1]} : vector<16x128xf32> to vector<16x32xf32>
    %44 = vector.shape_cast %43 : vector<16x32xf32> to vector<2x8x32xf32>
    %45 = arith.truncf %44 : vector<2x8x32xf32> to vector<2x8x32xbf16>
    "tpu.trace_start"() <{level = 10 : i32, message = "bqd,bkd->bqk"}> : () -> ()
    %cst_18 = arith.constant dense<0.000000e+00> : vector<2x8x8xf32>
    %46 = tpu.matmul %39, %42, %cst_18 {dimension_numbers = #tpu.dot_dimension_numbers<[2], [2], [1], [1], [0, 0, 0, 1, 1, 1], [0], [0]>} : vector<2x8x32xbf16>, vector<2x8x32xbf16>, vector<2x8x8xf32> -> vector<2x8x8xf32>
    "tpu.trace_stop"() : () -> ()
    %cst_19 = arith.constant dense<0xFF800000> : vector<2x8xf32>
    %47 = vector.multi_reduction <maximumf>, %46, %cst_19 [2] : vector<2x8x8xf32> to vector<2x8xf32>
    %48 = vector.shape_cast %47 : vector<2x8xf32> to vector<2x8x1xf32>
    %49 = vector.broadcast %48 : vector<2x8x1xf32> to vector<2x8x8xf32>
    %50 = arith.subf %46, %49 : vector<2x8x8xf32>
    %51 = math.exp %50 : vector<2x8x8xf32>
    %cst_20 = arith.constant dense<0.000000e+00> : vector<2x8xf32>
    %52 = vector.multi_reduction <add>, %51, %cst_20 [2] : vector<2x8x8xf32> to vector<2x8xf32>
    %53 = vector.shape_cast %52 : vector<2x8xf32> to vector<2x8x1xf32>
    %54 = tpu.reciprocal %53 {approx = true} : vector<2x8x1xf32> -> vector<2x8x1xf32>
    %55 = vector.broadcast %54 : vector<2x8x1xf32> to vector<2x8x8xf32>
    %56 = arith.mulf %51, %55 : vector<2x8x8xf32>
    %57 = arith.truncf %56 : vector<2x8x8xf32> to vector<2x8x8xbf16>
    "tpu.trace_start"() <{level = 10 : i32, message = "bqk,bkd->bqd"}> : () -> ()
    %cst_21 = arith.constant dense<0.000000e+00> : vector<2x8x32xf32>
    %58 = tpu.matmul %57, %45, %cst_21 {dimension_numbers = #tpu.dot_dimension_numbers<[2], [1], [1], [2], [0, 0, 0, 1, 1, 2], [0], [0]>} : vector<2x8x8xbf16>, vector<2x8x32xbf16>, vector<2x8x32xf32> -> vector<2x8x32xf32>
    "tpu.trace_stop"() : () -> ()
    %59 = vector.shape_cast %58 : vector<2x8x32xf32> to vector<16x32xf32>
    %60 = arith.truncf %59 : vector<16x32xf32> to vector<16x32xbf16>
    %c0_22 = arith.constant 0 : index
    %c32 = arith.constant 32 : index
    %61 = vector.load %arg17[%c0_22, %c32] : memref<16x128xbf16, #tpu.memory_space<vmem>>, vector<16x32xbf16>
    tpu.vector_store %arg17[%c0_22, %c32], %60 {strides = array<i32>} : memref<16x128xbf16, #tpu.memory_space<vmem>>, vector<16x32xbf16>,
    %62 = vector.extract_strided_slice %7 {offsets = [0, 64], sizes = [16, 32], strides = [1, 1]} : vector<16x128xf32> to vector<16x32xf32>
    %63 = vector.shape_cast %62 : vector<16x32xf32> to vector<2x8x32xf32>
    %64 = arith.truncf %63 : vector<2x8x32xf32> to vector<2x8x32xbf16>
    %65 = vector.extract_strided_slice %9 {offsets = [0, 64], sizes = [16, 32], strides = [1, 1]} : vector<16x128xf32> to vector<16x32xf32>
    %66 = vector.shape_cast %65 : vector<16x32xf32> to vector<2x8x32xf32>
    %67 = arith.truncf %66 : vector<2x8x32xf32> to vector<2x8x32xbf16>
    %68 = vector.extract_strided_slice %11 {offsets = [0, 64], sizes = [16, 32], strides = [1, 1]} : vector<16x128xf32> to vector<16x32xf32>
    %69 = vector.shape_cast %68 : vector<16x32xf32> to vector<2x8x32xf32>
    %70 = arith.truncf %69 : vector<2x8x32xf32> to vector<2x8x32xbf16>
    "tpu.trace_start"() <{level = 10 : i32, message = "bqd,bkd->bqk"}> : () -> ()
    %cst_23 = arith.constant dense<0.000000e+00> : vector<2x8x8xf32>
    %71 = tpu.matmul %64, %67, %cst_23 {dimension_numbers = #tpu.dot_dimension_numbers<[2], [2], [1], [1], [0, 0, 0, 1, 1, 1], [0], [0]>} : vector<2x8x32xbf16>, vector<2x8x32xbf16>, vector<2x8x8xf32> -> vector<2x8x8xf32>
    "tpu.trace_stop"() : () -> ()
    %cst_24 = arith.constant dense<0xFF800000> : vector<2x8xf32>
    %72 = vector.multi_reduction <maximumf>, %71, %cst_24 [2] : vector<2x8x8xf32> to vector<2x8xf32>
    %73 = vector.shape_cast %72 : vector<2x8xf32> to vector<2x8x1xf32>
    %74 = vector.broadcast %73 : vector<2x8x1xf32> to vector<2x8x8xf32>
    %75 = arith.subf %71, %74 : vector<2x8x8xf32>
    %76 = math.exp %75 : vector<2x8x8xf32>
    %cst_25 = arith.constant dense<0.000000e+00> : vector<2x8xf32>
    %77 = vector.multi_reduction <add>, %76, %cst_25 [2] : vector<2x8x8xf32> to vector<2x8xf32>
    %78 = vector.shape_cast %77 : vector<2x8xf32> to vector<2x8x1xf32>
    %79 = tpu.reciprocal %78 {approx = true} : vector<2x8x1xf32> -> vector<2x8x1xf32>
    %80 = vector.broadcast %79 : vector<2x8x1xf32> to vector<2x8x8xf32>
    %81 = arith.mulf %76, %80 : vector<2x8x8xf32>
    %82 = arith.truncf %81 : vector<2x8x8xf32> to vector<2x8x8xbf16>
    "tpu.trace_start"() <{level = 10 : i32, message = "bqk,bkd->bqd"}> : () -> ()
    %cst_26 = arith.constant dense<0.000000e+00> : vector<2x8x32xf32>
    %83 = tpu.matmul %82, %70, %cst_26 {dimension_numbers = #tpu.dot_dimension_numbers<[2], [1], [1], [2], [0, 0, 0, 1, 1, 2], [0], [0]>} : vector<2x8x8xbf16>, vector<2x8x32xbf16>, vector<2x8x32xf32> -> vector<2x8x32xf32>
    "tpu.trace_stop"() : () -> ()
    %84 = vector.shape_cast %83 : vector<2x8x32xf32> to vector<16x32xf32>
    %85 = arith.truncf %84 : vector<16x32xf32> to vector<16x32xbf16>
    %c0_27 = arith.constant 0 : index
    %c64 = arith.constant 64 : index
    %86 = vector.load %arg17[%c0_27, %c64] : memref<16x128xbf16, #tpu.memory_space<vmem>>, vector<16x32xbf16>
    tpu.vector_store %arg17[%c0_27, %c64], %85 {strides = array<i32>} : memref<16x128xbf16, #tpu.memory_space<vmem>>, vector<16x32xbf16>,
    %87 = vector.extract_strided_slice %7 {offsets = [0, 96], sizes = [16, 32], strides = [1, 1]} : vector<16x128xf32> to vector<16x32xf32>
    %88 = vector.shape_cast %87 : vector<16x32xf32> to vector<2x8x32xf32>
    %89 = arith.truncf %88 : vector<2x8x32xf32> to vector<2x8x32xbf16>
    %90 = vector.extract_strided_slice %9 {offsets = [0, 96], sizes = [16, 32], strides = [1, 1]} : vector<16x128xf32> to vector<16x32xf32>
    %91 = vector.shape_cast %90 : vector<16x32xf32> to vector<2x8x32xf32>
    %92 = arith.truncf %91 : vector<2x8x32xf32> to vector<2x8x32xbf16>
    %93 = vector.extract_strided_slice %11 {offsets = [0, 96], sizes = [16, 32], strides = [1, 1]} : vector<16x128xf32> to vector<16x32xf32>
    %94 = vector.shape_cast %93 : vector<16x32xf32> to vector<2x8x32xf32>
    %95 = arith.truncf %94 : vector<2x8x32xf32> to vector<2x8x32xbf16>
    "tpu.trace_start"() <{level = 10 : i32, message = "bqd,bkd->bqk"}> : () -> ()
    %cst_28 = arith.constant dense<0.000000e+00> : vector<2x8x8xf32>
    %96 = tpu.matmul %89, %92, %cst_28 {dimension_numbers = #tpu.dot_dimension_numbers<[2], [2], [1], [1], [0, 0, 0, 1, 1, 1], [0], [0]>} : vector<2x8x32xbf16>, vector<2x8x32xbf16>, vector<2x8x8xf32> -> vector<2x8x8xf32>
    "tpu.trace_stop"() : () -> ()
    %cst_29 = arith.constant dense<0xFF800000> : vector<2x8xf32>
    %97 = vector.multi_reduction <maximumf>, %96, %cst_29 [2] : vector<2x8x8xf32> to vector<2x8xf32>
    %98 = vector.shape_cast %97 : vector<2x8xf32> to vector<2x8x1xf32>
    %99 = vector.broadcast %98 : vector<2x8x1xf32> to vector<2x8x8xf32>
    %100 = arith.subf %96, %99 : vector<2x8x8xf32>
    %101 = math.exp %100 : vector<2x8x8xf32>
    %cst_30 = arith.constant dense<0.000000e+00> : vector<2x8xf32>
    %102 = vector.multi_reduction <add>, %101, %cst_30 [2] : vector<2x8x8xf32> to vector<2x8xf32>
    %103 = vector.shape_cast %102 : vector<2x8xf32> to vector<2x8x1xf32>
    %104 = tpu.reciprocal %103 {approx = true} : vector<2x8x1xf32> -> vector<2x8x1xf32>
    %105 = vector.broadcast %104 : vector<2x8x1xf32> to vector<2x8x8xf32>
    %106 = arith.mulf %101, %105 : vector<2x8x8xf32>
    %107 = arith.truncf %106 : vector<2x8x8xf32> to vector<2x8x8xbf16>
    "tpu.trace_start"() <{level = 10 : i32, message = "bqk,bkd->bqd"}> : () -> ()
    %cst_31 = arith.constant dense<0.000000e+00> : vector<2x8x32xf32>
    %108 = tpu.matmul %107, %95, %cst_31 {dimension_numbers = #tpu.dot_dimension_numbers<[2], [1], [1], [2], [0, 0, 0, 1, 1, 2], [0], [0]>} : vector<2x8x8xbf16>, vector<2x8x32xbf16>, vector<2x8x32xf32> -> vector<2x8x32xf32>
    "tpu.trace_stop"() : () -> ()
    %109 = vector.shape_cast %108 : vector<2x8x32xf32> to vector<16x32xf32>
    %110 = arith.truncf %109 : vector<16x32xf32> to vector<16x32xbf16>
    %c0_32 = arith.constant 0 : index
    %c96 = arith.constant 96 : index
    %111 = vector.load %arg17[%c0_32, %c96] : memref<16x128xbf16, #tpu.memory_space<vmem>>, vector<16x32xbf16>
    tpu.vector_store %arg17[%c0_32, %c96], %110 {strides = array<i32>} : memref<16x128xbf16, #tpu.memory_space<vmem>>, vector<16x32xbf16>,
    %c0_33 = arith.constant 0 : index
    %c0_34 = arith.constant 0 : index
    %112 = vector.load %arg17[%c0_33, %c0_34] : memref<16x128xbf16, #tpu.memory_space<vmem>>, vector<16x128xbf16>
    %c0_35 = arith.constant 0 : index
    %c0_36 = arith.constant 0 : index
    %113 = vector.load %arg6[%c0_35, %c0_36] : memref<128x128xbf16, #tpu.memory_space<vmem>>, vector<128x128xbf16>
    %cst_37 = arith.constant dense<0.000000e+00> : vector<16x128xf32>
    %114 = tpu.matmul %112, %113, %cst_37 {dimension_numbers = #tpu.dot_dimension_numbers<[1], [0], [0], [1], [0, 0, 1, 1], [], []>} : vector<16x128xbf16>, vector<128x128xbf16>, vector<16x128xf32> -> vector<16x128xf32>
    %c0_38 = arith.constant 0 : index
    %c0_39 = arith.constant 0 : index
    %115 = vector.load %arg7[%c0_38, %c0_39] : memref<1x128xf32, #tpu.memory_space<vmem>>, vector<1x128xf32>
    %116 = vector.broadcast %115 : vector<1x128xf32> to vector<16x128xf32>
    %117 = arith.addf %114, %116 : vector<16x128xf32>
    %118 = vector.shape_cast %117 : vector<16x128xf32> to vector<2x8x128xf32>
    %119 = arith.addf %0, %118 : vector<2x8x128xf32>
    %120 = vector.shape_cast %119 : vector<2x8x128xf32> to vector<16x128xf32>
    %121 = arith.truncf %120 : vector<16x128xf32> to vector<16x128xbf16>
    %c0_40 = arith.constant 0 : index
    %c0_41 = arith.constant 0 : index
    %122 = vector.load %arg8[%c0_40, %c0_41] : memref<128x128xbf16, #tpu.memory_space<vmem>>, vector<128x128xbf16>
    %cst_42 = arith.constant dense<0.000000e+00> : vector<16x128xf32>
    %123 = tpu.matmul %121, %122, %cst_42 {dimension_numbers = #tpu.dot_dimension_numbers<[1], [0], [0], [1], [0, 0, 1, 1], [], []>} : vector<16x128xbf16>, vector<128x128xbf16>, vector<16x128xf32> -> vector<16x128xf32>
    %c0_43 = arith.constant 0 : index
    %c0_44 = arith.constant 0 : index
    %124 = vector.load %arg11[%c0_43, %c0_44] : memref<1x128xf32, #tpu.memory_space<vmem>>, vector<1x128xf32>
    %125 = vector.broadcast %124 : vector<1x128xf32> to vector<16x128xf32>
    %126 = arith.addf %123, %125 : vector<16x128xf32>
    %c0_45 = arith.constant 0 : index
    %c0_46 = arith.constant 0 : index
    %127 = vector.load %arg9[%c0_45, %c0_46] : memref<128x128xbf16, #tpu.memory_space<vmem>>, vector<128x128xbf16>
    %cst_47 = arith.constant dense<0.000000e+00> : vector<16x128xf32>
    %128 = tpu.matmul %121, %127, %cst_47 {dimension_numbers = #tpu.dot_dimension_numbers<[1], [0], [0], [1], [0, 0, 1, 1], [], []>} : vector<16x128xbf16>, vector<128x128xbf16>, vector<16x128xf32> -> vector<16x128xf32>
    %c0_48 = arith.constant 0 : index
    %c0_49 = arith.constant 0 : index
    %129 = vector.load %arg10[%c0_48, %c0_49] : memref<128x128xbf16, #tpu.memory_space<vmem>>, vector<128x128xbf16>
    %cst_50 = arith.constant dense<0.000000e+00> : vector<16x128xf32>
    %130 = tpu.matmul %121, %129, %cst_50 {dimension_numbers = #tpu.dot_dimension_numbers<[1], [0], [0], [1], [0, 0, 1, 1], [], []>} : vector<16x128xbf16>, vector<128x128xbf16>, vector<16x128xf32> -> vector<16x128xf32>
    %131 = vector.extract_strided_slice %126 {offsets = [0, 0], sizes = [16, 32], strides = [1, 1]} : vector<16x128xf32> to vector<16x32xf32>
    %132 = vector.shape_cast %131 : vector<16x32xf32> to vector<2x8x32xf32>
    %133 = arith.truncf %132 : vector<2x8x32xf32> to vector<2x8x32xbf16>
    %134 = vector.extract_strided_slice %128 {offsets = [0, 0], sizes = [16, 32], strides = [1, 1]} : vector<16x128xf32> to vector<16x32xf32>
    %135 = vector.shape_cast %134 : vector<16x32xf32> to vector<2x8x32xf32>
    %136 = arith.truncf %135 : vector<2x8x32xf32> to vector<2x8x32xbf16>
    %137 = vector.extract_strided_slice %130 {offsets = [0, 0], sizes = [16, 32], strides = [1, 1]} : vector<16x128xf32> to vector<16x32xf32>
    %138 = vector.shape_cast %137 : vector<16x32xf32> to vector<2x8x32xf32>
    %139 = arith.truncf %138 : vector<2x8x32xf32> to vector<2x8x32xbf16>
    "tpu.trace_start"() <{level = 10 : i32, message = "bqd,bkd->bqk"}> : () -> ()
    %cst_51 = arith.constant dense<0.000000e+00> : vector<2x8x8xf32>
    %140 = tpu.matmul %133, %136, %cst_51 {dimension_numbers = #tpu.dot_dimension_numbers<[2], [2], [1], [1], [0, 0, 0, 1, 1, 1], [0], [0]>} : vector<2x8x32xbf16>, vector<2x8x32xbf16>, vector<2x8x8xf32> -> vector<2x8x8xf32>
    "tpu.trace_stop"() : () -> ()
    %cst_52 = arith.constant dense<0xFF800000> : vector<2x8xf32>
    %141 = vector.multi_reduction <maximumf>, %140, %cst_52 [2] : vector<2x8x8xf32> to vector<2x8xf32>
    %142 = vector.shape_cast %141 : vector<2x8xf32> to vector<2x8x1xf32>
    %143 = vector.broadcast %142 : vector<2x8x1xf32> to vector<2x8x8xf32>
    %144 = arith.subf %140, %143 : vector<2x8x8xf32>
    %145 = math.exp %144 : vector<2x8x8xf32>
    %cst_53 = arith.constant dense<0.000000e+00> : vector<2x8xf32>
    %146 = vector.multi_reduction <add>, %145, %cst_53 [2] : vector<2x8x8xf32> to vector<2x8xf32>
    %147 = vector.shape_cast %146 : vector<2x8xf32> to vector<2x8x1xf32>
    %148 = tpu.reciprocal %147 {approx = true} : vector<2x8x1xf32> -> vector<2x8x1xf32>
    %149 = vector.broadcast %148 : vector<2x8x1xf32> to vector<2x8x8xf32>
    %150 = arith.mulf %145, %149 : vector<2x8x8xf32>
    %151 = arith.truncf %150 : vector<2x8x8xf32> to vector<2x8x8xbf16>
    "tpu.trace_start"() <{level = 10 : i32, message = "bqk,bkd->bqd"}> : () -> ()
    %cst_54 = arith.constant dense<0.000000e+00> : vector<2x8x32xf32>
    %152 = tpu.matmul %151, %139, %cst_54 {dimension_numbers = #tpu.dot_dimension_numbers<[2], [1], [1], [2], [0, 0, 0, 1, 1, 2], [0], [0]>} : vector<2x8x8xbf16>, vector<2x8x32xbf16>, vector<2x8x32xf32> -> vector<2x8x32xf32>
    "tpu.trace_stop"() : () -> ()
    %153 = vector.shape_cast %152 : vector<2x8x32xf32> to vector<16x32xf32>
    %154 = arith.truncf %153 : vector<16x32xf32> to vector<16x32xbf16>
    %c0_55 = arith.constant 0 : index
    %c0_56 = arith.constant 0 : index
    %155 = vector.load %arg17[%c0_55, %c0_56] : memref<16x128xbf16, #tpu.memory_space<vmem>>, vector<16x32xbf16>
    tpu.vector_store %arg17[%c0_55, %c0_56], %154 {strides = array<i32>} : memref<16x128xbf16, #tpu.memory_space<vmem>>, vector<16x32xbf16>,
    %156 = vector.extract_strided_slice %126 {offsets = [0, 32], sizes = [16, 32], strides = [1, 1]} : vector<16x128xf32> to vector<16x32xf32>
    %157 = vector.shape_cast %156 : vector<16x32xf32> to vector<2x8x32xf32>
    %158 = arith.truncf %157 : vector<2x8x32xf32> to vector<2x8x32xbf16>
    %159 = vector.extract_strided_slice %128 {offsets = [0, 32], sizes = [16, 32], strides = [1, 1]} : vector<16x128xf32> to vector<16x32xf32>
    %160 = vector.shape_cast %159 : vector<16x32xf32> to vector<2x8x32xf32>
    %161 = arith.truncf %160 : vector<2x8x32xf32> to vector<2x8x32xbf16>
    %162 = vector.extract_strided_slice %130 {offsets = [0, 32], sizes = [16, 32], strides = [1, 1]} : vector<16x128xf32> to vector<16x32xf32>
    %163 = vector.shape_cast %162 : vector<16x32xf32> to vector<2x8x32xf32>
    %164 = arith.truncf %163 : vector<2x8x32xf32> to vector<2x8x32xbf16>
    "tpu.trace_start"() <{level = 10 : i32, message = "bqd,bkd->bqk"}> : () -> ()
    %cst_57 = arith.constant dense<0.000000e+00> : vector<2x8x8xf32>
    %165 = tpu.matmul %158, %161, %cst_57 {dimension_numbers = #tpu.dot_dimension_numbers<[2], [2], [1], [1], [0, 0, 0, 1, 1, 1], [0], [0]>} : vector<2x8x32xbf16>, vector<2x8x32xbf16>, vector<2x8x8xf32> -> vector<2x8x8xf32>
    "tpu.trace_stop"() : () -> ()
    %cst_58 = arith.constant dense<0xFF800000> : vector<2x8xf32>
    %166 = vector.multi_reduction <maximumf>, %165, %cst_58 [2] : vector<2x8x8xf32> to vector<2x8xf32>
    %167 = vector.shape_cast %166 : vector<2x8xf32> to vector<2x8x1xf32>
    %168 = vector.broadcast %167 : vector<2x8x1xf32> to vector<2x8x8xf32>
    %169 = arith.subf %165, %168 : vector<2x8x8xf32>
    %170 = math.exp %169 : vector<2x8x8xf32>
    %cst_59 = arith.constant dense<0.000000e+00> : vector<2x8xf32>
    %171 = vector.multi_reduction <add>, %170, %cst_59 [2] : vector<2x8x8xf32> to vector<2x8xf32>
    %172 = vector.shape_cast %171 : vector<2x8xf32> to vector<2x8x1xf32>
    %173 = tpu.reciprocal %172 {approx = true} : vector<2x8x1xf32> -> vector<2x8x1xf32>
    %174 = vector.broadcast %173 : vector<2x8x1xf32> to vector<2x8x8xf32>
    %175 = arith.mulf %170, %174 : vector<2x8x8xf32>
    %176 = arith.truncf %175 : vector<2x8x8xf32> to vector<2x8x8xbf16>
    "tpu.trace_start"() <{level = 10 : i32, message = "bqk,bkd->bqd"}> : () -> ()
    %cst_60 = arith.constant dense<0.000000e+00> : vector<2x8x32xf32>
    %177 = tpu.matmul %176, %164, %cst_60 {dimension_numbers = #tpu.dot_dimension_numbers<[2], [1], [1], [2], [0, 0, 0, 1, 1, 2], [0], [0]>} : vector<2x8x8xbf16>, vector<2x8x32xbf16>, vector<2x8x32xf32> -> vector<2x8x32xf32>
    "tpu.trace_stop"() : () -> ()
    %178 = vector.shape_cast %177 : vector<2x8x32xf32> to vector<16x32xf32>
    %179 = arith.truncf %178 : vector<16x32xf32> to vector<16x32xbf16>
    %c0_61 = arith.constant 0 : index
    %c32_62 = arith.constant 32 : index
    %180 = vector.load %arg17[%c0_61, %c32_62] : memref<16x128xbf16, #tpu.memory_space<vmem>>, vector<16x32xbf16>
    tpu.vector_store %arg17[%c0_61, %c32_62], %179 {strides = array<i32>} : memref<16x128xbf16, #tpu.memory_space<vmem>>, vector<16x32xbf16>,
    %181 = vector.extract_strided_slice %126 {offsets = [0, 64], sizes = [16, 32], strides = [1, 1]} : vector<16x128xf32> to vector<16x32xf32>
    %182 = vector.shape_cast %181 : vector<16x32xf32> to vector<2x8x32xf32>
    %183 = arith.truncf %182 : vector<2x8x32xf32> to vector<2x8x32xbf16>
    %184 = vector.extract_strided_slice %128 {offsets = [0, 64], sizes = [16, 32], strides = [1, 1]} : vector<16x128xf32> to vector<16x32xf32>
    %185 = vector.shape_cast %184 : vector<16x32xf32> to vector<2x8x32xf32>
    %186 = arith.truncf %185 : vector<2x8x32xf32> to vector<2x8x32xbf16>
    %187 = vector.extract_strided_slice %130 {offsets = [0, 64], sizes = [16, 32], strides = [1, 1]} : vector<16x128xf32> to vector<16x32xf32>
    %188 = vector.shape_cast %187 : vector<16x32xf32> to vector<2x8x32xf32>
    %189 = arith.truncf %188 : vector<2x8x32xf32> to vector<2x8x32xbf16>
    "tpu.trace_start"() <{level = 10 : i32, message = "bqd,bkd->bqk"}> : () -> ()
    %cst_63 = arith.constant dense<0.000000e+00> : vector<2x8x8xf32>
    %190 = tpu.matmul %183, %186, %cst_63 {dimension_numbers = #tpu.dot_dimension_numbers<[2], [2], [1], [1], [0, 0, 0, 1, 1, 1], [0], [0]>} : vector<2x8x32xbf16>, vector<2x8x32xbf16>, vector<2x8x8xf32> -> vector<2x8x8xf32>
    "tpu.trace_stop"() : () -> ()
    %cst_64 = arith.constant dense<0xFF800000> : vector<2x8xf32>
    %191 = vector.multi_reduction <maximumf>, %190, %cst_64 [2] : vector<2x8x8xf32> to vector<2x8xf32>
    %192 = vector.shape_cast %191 : vector<2x8xf32> to vector<2x8x1xf32>
    %193 = vector.broadcast %192 : vector<2x8x1xf32> to vector<2x8x8xf32>
    %194 = arith.subf %190, %193 : vector<2x8x8xf32>
    %195 = math.exp %194 : vector<2x8x8xf32>
    %cst_65 = arith.constant dense<0.000000e+00> : vector<2x8xf32>
    %196 = vector.multi_reduction <add>, %195, %cst_65 [2] : vector<2x8x8xf32> to vector<2x8xf32>
    %197 = vector.shape_cast %196 : vector<2x8xf32> to vector<2x8x1xf32>
    %198 = tpu.reciprocal %197 {approx = true} : vector<2x8x1xf32> -> vector<2x8x1xf32>
    %199 = vector.broadcast %198 : vector<2x8x1xf32> to vector<2x8x8xf32>
    %200 = arith.mulf %195, %199 : vector<2x8x8xf32>
    %201 = arith.truncf %200 : vector<2x8x8xf32> to vector<2x8x8xbf16>
    "tpu.trace_start"() <{level = 10 : i32, message = "bqk,bkd->bqd"}> : () -> ()
    %cst_66 = arith.constant dense<0.000000e+00> : vector<2x8x32xf32>
    %202 = tpu.matmul %201, %189, %cst_66 {dimension_numbers = #tpu.dot_dimension_numbers<[2], [1], [1], [2], [0, 0, 0, 1, 1, 2], [0], [0]>} : vector<2x8x8xbf16>, vector<2x8x32xbf16>, vector<2x8x32xf32> -> vector<2x8x32xf32>
    "tpu.trace_stop"() : () -> ()
    %203 = vector.shape_cast %202 : vector<2x8x32xf32> to vector<16x32xf32>
    %204 = arith.truncf %203 : vector<16x32xf32> to vector<16x32xbf16>
    %c0_67 = arith.constant 0 : index
    %c64_68 = arith.constant 64 : index
    %205 = vector.load %arg17[%c0_67, %c64_68] : memref<16x128xbf16, #tpu.memory_space<vmem>>, vector<16x32xbf16>
    tpu.vector_store %arg17[%c0_67, %c64_68], %204 {strides = array<i32>} : memref<16x128xbf16, #tpu.memory_space<vmem>>, vector<16x32xbf16>,
    %206 = vector.extract_strided_slice %126 {offsets = [0, 96], sizes = [16, 32], strides = [1, 1]} : vector<16x128xf32> to vector<16x32xf32>
    %207 = vector.shape_cast %206 : vector<16x32xf32> to vector<2x8x32xf32>
    %208 = arith.truncf %207 : vector<2x8x32xf32> to vector<2x8x32xbf16>
    %209 = vector.extract_strided_slice %128 {offsets = [0, 96], sizes = [16, 32], strides = [1, 1]} : vector<16x128xf32> to vector<16x32xf32>
    %210 = vector.shape_cast %209 : vector<16x32xf32> to vector<2x8x32xf32>
    %211 = arith.truncf %210 : vector<2x8x32xf32> to vector<2x8x32xbf16>
    %212 = vector.extract_strided_slice %130 {offsets = [0, 96], sizes = [16, 32], strides = [1, 1]} : vector<16x128xf32> to vector<16x32xf32>
    %213 = vector.shape_cast %212 : vector<16x32xf32> to vector<2x8x32xf32>
    %214 = arith.truncf %213 : vector<2x8x32xf32> to vector<2x8x32xbf16>
    "tpu.trace_start"() <{level = 10 : i32, message = "bqd,bkd->bqk"}> : () -> ()
    %cst_69 = arith.constant dense<0.000000e+00> : vector<2x8x8xf32>
    %215 = tpu.matmul %208, %211, %cst_69 {dimension_numbers = #tpu.dot_dimension_numbers<[2], [2], [1], [1], [0, 0, 0, 1, 1, 1], [0], [0]>} : vector<2x8x32xbf16>, vector<2x8x32xbf16>, vector<2x8x8xf32> -> vector<2x8x8xf32>
    "tpu.trace_stop"() : () -> ()
    %cst_70 = arith.constant dense<0xFF800000> : vector<2x8xf32>
    %216 = vector.multi_reduction <maximumf>, %215, %cst_70 [2] : vector<2x8x8xf32> to vector<2x8xf32>
    %217 = vector.shape_cast %216 : vector<2x8xf32> to vector<2x8x1xf32>
    %218 = vector.broadcast %217 : vector<2x8x1xf32> to vector<2x8x8xf32>
    %219 = arith.subf %215, %218 : vector<2x8x8xf32>
    %220 = math.exp %219 : vector<2x8x8xf32>
    %cst_71 = arith.constant dense<0.000000e+00> : vector<2x8xf32>
    %221 = vector.multi_reduction <add>, %220, %cst_71 [2] : vector<2x8x8xf32> to vector<2x8xf32>
    %222 = vector.shape_cast %221 : vector<2x8xf32> to vector<2x8x1xf32>
    %223 = tpu.reciprocal %222 {approx = true} : vector<2x8x1xf32> -> vector<2x8x1xf32>
    %224 = vector.broadcast %223 : vector<2x8x1xf32> to vector<2x8x8xf32>
    %225 = arith.mulf %220, %224 : vector<2x8x8xf32>
    %226 = arith.truncf %225 : vector<2x8x8xf32> to vector<2x8x8xbf16>
    "tpu.trace_start"() <{level = 10 : i32, message = "bqk,bkd->bqd"}> : () -> ()
    %cst_72 = arith.constant dense<0.000000e+00> : vector<2x8x32xf32>
    %227 = tpu.matmul %226, %214, %cst_72 {dimension_numbers = #tpu.dot_dimension_numbers<[2], [1], [1], [2], [0, 0, 0, 1, 1, 2], [0], [0]>} : vector<2x8x8xbf16>, vector<2x8x32xbf16>, vector<2x8x32xf32> -> vector<2x8x32xf32>
    "tpu.trace_stop"() : () -> ()
    %228 = vector.shape_cast %227 : vector<2x8x32xf32> to vector<16x32xf32>
    %229 = arith.truncf %228 : vector<16x32xf32> to vector<16x32xbf16>
    %c0_73 = arith.constant 0 : index
    %c96_74 = arith.constant 96 : index
    %230 = vector.load %arg17[%c0_73, %c96_74] : memref<16x128xbf16, #tpu.memory_space<vmem>>, vector<16x32xbf16>
    tpu.vector_store %arg17[%c0_73, %c96_74], %229 {strides = array<i32>} : memref<16x128xbf16, #tpu.memory_space<vmem>>, vector<16x32xbf16>,
    %c0_75 = arith.constant 0 : index
    %c0_76 = arith.constant 0 : index
    %231 = vector.load %arg17[%c0_75, %c0_76] : memref<16x128xbf16, #tpu.memory_space<vmem>>, vector<16x128xbf16>
    %c0_77 = arith.constant 0 : index
    %c0_78 = arith.constant 0 : index
    %232 = vector.load %arg12[%c0_77, %c0_78] : memref<128x128xbf16, #tpu.memory_space<vmem>>, vector<128x128xbf16>
    %cst_79 = arith.constant dense<0.000000e+00> : vector<16x128xf32>
    %233 = tpu.matmul %231, %232, %cst_79 {dimension_numbers = #tpu.dot_dimension_numbers<[1], [0], [0], [1], [0, 0, 1, 1], [], []>} : vector<16x128xbf16>, vector<128x128xbf16>, vector<16x128xf32> -> vector<16x128xf32>
    %c0_80 = arith.constant 0 : index
    %c0_81 = arith.constant 0 : index
    %234 = vector.load %arg13[%c0_80, %c0_81] : memref<1x128xf32, #tpu.memory_space<vmem>>, vector<1x128xf32>
    %235 = vector.broadcast %234 : vector<1x128xf32> to vector<16x128xf32>
    %236 = arith.addf %233, %235 : vector<16x128xf32>
    %237 = vector.shape_cast %236 : vector<16x128xf32> to vector<2x8x128xf32>
    %238 = arith.addf %119, %237 : vector<2x8x128xf32>
    %cst_82 = arith.constant dense<0.000000e+00> : vector<2x8xf32>
    %239 = vector.multi_reduction <add>, %238, %cst_82 [2] : vector<2x8x128xf32> to vector<2x8xf32>
    %240 = vector.shape_cast %239 : vector<2x8xf32> to vector<2x8x1xf32>
    %cst_83 = arith.constant 1.280000e+02 : f32
    %241 = vector.broadcast %cst_83 : f32 to vector<2x8x1xf32>
    %242 = arith.divf %240, %241 : vector<2x8x1xf32>
    %243 = vector.broadcast %242 : vector<2x8x1xf32> to vector<2x8x128xf32>
    %244 = arith.subf %238, %243 : vector<2x8x128xf32>
    %245 = arith.mulf %244, %244 : vector<2x8x128xf32>
    %cst_84 = arith.constant dense<0.000000e+00> : vector<2x8xf32>
    %246 = vector.multi_reduction <add>, %245, %cst_84 [2] : vector<2x8x128xf32> to vector<2x8xf32>
    %247 = vector.shape_cast %246 : vector<2x8xf32> to vector<2x8x1xf32>
    %cst_85 = arith.constant 1.280000e+02 : f32
    %248 = vector.broadcast %cst_85 : f32 to vector<2x8x1xf32>
    %249 = arith.divf %247, %248 : vector<2x8x1xf32>
    %cst_86 = arith.constant 9.99999974E-6 : f32
    %250 = vector.broadcast %cst_86 : f32 to vector<2x8x1xf32>
    %251 = arith.addf %249, %250 : vector<2x8x1xf32>
    %252 = math.rsqrt %251 : vector<2x8x1xf32>
    %253 = vector.broadcast %252 : vector<2x8x1xf32> to vector<2x8x128xf32>
    %254 = arith.mulf %244, %253 : vector<2x8x128xf32>
    %c0_87 = arith.constant 0 : index
    %c0_88 = arith.constant 0 : index
    %255 = vector.load %arg14[%c0_87, %c0_88] : memref<1x128xf32, #tpu.memory_space<vmem>>, vector<1x128xf32>
    %256 = vector.shape_cast %255 : vector<1x128xf32> to vector<1x1x128xf32>
    %257 = vector.broadcast %256 : vector<1x1x128xf32> to vector<2x8x128xf32>
    %258 = arith.mulf %254, %257 : vector<2x8x128xf32>
    %c0_89 = arith.constant 0 : index
    %c0_90 = arith.constant 0 : index
    %259 = vector.load %arg15[%c0_89, %c0_90] : memref<1x128xf32, #tpu.memory_space<vmem>>, vector<1x128xf32>
    %260 = vector.shape_cast %259 : vector<1x128xf32> to vector<1x1x128xf32>
    %261 = vector.broadcast %260 : vector<1x1x128xf32> to vector<2x8x128xf32>
    %262 = arith.addf %258, %261 : vector<2x8x128xf32>
    %c0_91 = arith.constant 0 : index
    %c0_92 = arith.constant 0 : index
    %c0_93 = arith.constant 0 : index
    %263 = vector.load %arg16[%c0_91, %c0_92, %c0_93] : memref<2x8x128xf32, #tpu.memory_space<vmem>>, vector<2x8x128xf32>
    tpu.vector_store %arg16[%c0_91, %c0_92, %c0_93], %262 {strides = array<i32>} : memref<2x8x128xf32, #tpu.memory_space<vmem>>, vector<2x8x128xf32>,
    return
  }
  func.func @transform_0(%arg0: i32) -> (i32, i32, i32) {
    %c0_i32 = arith.constant 0 : i32
    %c0_i32_0 = arith.constant 0 : i32
    %c0_i32_1 = arith.constant 0 : i32
    return %arg0, %c0_i32, %c0_i32_0 : i32, i32, i32
  }
  func.func @transform_1(%arg0: i32) -> (i32, i32) {
    %c0_i32 = arith.constant 0 : i32
    %c0_i32_0 = arith.constant 0 : i32
    %c0_i32_1 = arith.constant 0 : i32
    return %c0_i32, %c0_i32_0 : i32, i32
  }
  func.func @transform_2(%arg0: i32) -> (i32, i32) {
    %c0_i32 = arith.constant 0 : i32
    %c0_i32_0 = arith.constant 0 : i32
    %c0_i32_1 = arith.constant 0 : i32
    return %c0_i32, %c0_i32_0 : i32, i32
  }
  func.func @transform_3(%arg0: i32) -> (i32, i32) {
    %c0_i32 = arith.constant 0 : i32
    %c0_i32_0 = arith.constant 0 : i32
    %c0_i32_1 = arith.constant 0 : i32
    return %c0_i32, %c0_i32_0 : i32, i32
  }
  func.func @transform_4(%arg0: i32) -> (i32, i32) {
    %c0_i32 = arith.constant 0 : i32
    %c0_i32_0 = arith.constant 0 : i32
    %c0_i32_1 = arith.constant 0 : i32
    return %c0_i32, %c0_i32_0 : i32, i32
  }
  func.func @transform_5(%arg0: i32) -> (i32, i32) {
    %c0_i32 = arith.constant 0 : i32
    %c0_i32_0 = arith.constant 0 : i32
    %c0_i32_1 = arith.constant 0 : i32
    return %c0_i32, %c0_i32_0 : i32, i32
  }
  func.func @transform_6(%arg0: i32) -> (i32, i32) {
    %c0_i32 = arith.constant 0 : i32
    %c0_i32_0 = arith.constant 0 : i32
    %c0_i32_1 = arith.constant 0 : i32
    return %c0_i32, %c0_i32_0 : i32, i32
  }
  func.func @transform_7(%arg0: i32) -> (i32, i32) {
    %c0_i32 = arith.constant 0 : i32
    %c0_i32_0 = arith.constant 0 : i32
    %c0_i32_1 = arith.constant 0 : i32
    return %c0_i32, %c0_i32_0 : i32, i32
  }
  func.func @transform_8(%arg0: i32) -> (i32, i32) {
    %c0_i32 = arith.constant 0 : i32
    %c0_i32_0 = arith.constant 0 : i32
    %c0_i32_1 = arith.constant 0 : i32
    return %c0_i32, %c0_i32_0 : i32, i32
  }
  func.func @transform_9(%arg0: i32) -> (i32, i32) {
    %c0_i32 = arith.constant 0 : i32
    %c0_i32_0 = arith.constant 0 : i32
    %c0_i32_1 = arith.constant 0 : i32
    return %c0_i32, %c0_i32_0 : i32, i32
  }
  func.func @transform_10(%arg0: i32) -> (i32, i32) {
    %c0_i32 = arith.constant 0 : i32
    %c0_i32_0 = arith.constant 0 : i32
    %c0_i32_1 = arith.constant 0 : i32
    return %c0_i32, %c0_i32_0 : i32, i32
  }
  func.func @transform_11(%arg0: i32) -> (i32, i32) {
    %c0_i32 = arith.constant 0 : i32
    %c0_i32_0 = arith.constant 0 : i32
    %c0_i32_1 = arith.constant 0 : i32
    return %c0_i32, %c0_i32_0 : i32, i32
  }
  func.func @transform_12(%arg0: i32) -> (i32, i32) {
    %c0_i32 = arith.constant 0 : i32
    %c0_i32_0 = arith.constant 0 : i32
    %c0_i32_1 = arith.constant 0 : i32
    return %c0_i32, %c0_i32_0 : i32, i32
  }
  func.func @transform_13(%arg0: i32) -> (i32, i32) {
    %c0_i32 = arith.constant 0 : i32
    %c0_i32_0 = arith.constant 0 : i32
    %c0_i32_1 = arith.constant 0 : i32
    return %c0_i32, %c0_i32_0 : i32, i32
  }
  func.func @transform_14(%arg0: i32) -> (i32, i32) {
    %c0_i32 = arith.constant 0 : i32
    %c0_i32_0 = arith.constant 0 : i32
    %c0_i32_1 = arith.constant 0 : i32
    return %c0_i32, %c0_i32_0 : i32, i32
  }
  func.func @transform_15(%arg0: i32) -> (i32, i32, i32) {
    %c0_i32 = arith.constant 0 : i32
    %c0_i32_0 = arith.constant 0 : i32
    %c0_i32_1 = arith.constant 0 : i32
    return %arg0, %c0_i32, %c0_i32_0 : i32, i32, i32
  }
}

</mosaic_0001>

<bundles_post_ra>
// kernel: tpu_custom_call.1
= control target key start
LH: loop header
LB: loop body
LE: loop exit
PB: predicated region body
PF: predicated region fallthrough
CT: control target
= control target key end

     0   :  { %s5692_s0 = inlined_call_operand.hbm [shape: f32[4,8,128], index: 0, kind: input, shape index: {}]   ;;  %s5693_s1 = inlined_call_operand.hbm [shape: bf16[128,128], index: 1, kind: input, shape index: {}]   ;;  %s5694_s2 = inlined_call_operand.hbm [shape: bf16[128,128], index: 2, kind: input, shape index: {}]   ;;  %s5695_s3 = inlined_call_operand.hbm [shape: bf16[128,128], index: 3, kind: input, shape index: {}]   ;;  %s5696_s4 = inlined_call_operand.vmem [shape: f32[1,128], index: 4, kind: input, shape index: {}]   ;;  %s5697_s5 = inlined_call_operand.hbm [shape: bf16[128,128], index: 5, kind: input, shape index: {}]   ;;  %s5698_s6 = inlined_call_operand.vmem [shape: f32[1,128], index: 6, kind: input, shape index: {}]   ;;  %s5699_s7 = inlined_call_operand.hbm [shape: bf16[128,128], index: 7, kind: input, shape index: {}]   ;;  %s5700_s8 = inlined_call_operand.hbm [shape: bf16[128,128], index: 8, kind: input, shape index: {}]   ;;  %s5701_s9 = inlined_call_operand.hbm [shape: bf16[128,128], index: 9, kind: input, shape index: {}]   ;;  %s5702_s10 = inlined_call_operand.vmem [shape: f32[1,128], index: 10, kind: input, shape index: {}]   ;;  %s5703_s11 = inlined_call_operand.hbm [shape: bf16[128,128], index: 11, kind: input, shape index: {}]   ;;  %s5704_s12 = inlined_call_operand.vmem [shape: f32[1,128], index: 12, kind: input, shape index: {}]   ;;  %s5705_s13 = inlined_call_operand.vmem [shape: f32[1,128], index: 13, kind: input, shape index: {}]   ;;  %s5706_s14 = inlined_call_operand.vmem [shape: f32[1,128], index: 14, kind: input, shape index: {}]   ;;  %s5707_s15 = inlined_call_operand.hbm [shape: f32[4,8,128], index: 15, kind: output, shape index: {}]  }
   0x1   :  { %5712 = sst [smem:[#allocation25_spill]] %s5693_s1 }
   0x2   :  { %5713 = sst [smem:[#allocation26_spill]] %s5696_s4 }
   0x3   :  { %5714 = sst [smem:[#allocation27_spill]] %s5698_s6 }
   0x4   :  { %5715 = sst [smem:[#allocation28_spill]] %s5702_s10 }
   0x5   :  { %5716 = sst [smem:[#allocation29_spill]] %s5704_s12 }
   0x6   :  { %5717 = sst [smem:[#allocation30_spill]] %s5705_s13 }
   0x7   :  { %5718 = sst [smem:[#allocation31_spill]] %s5706_s14 }
   0x8   :  { %5719 = sst [smem:[#allocation32_spill]] %s5707_s15 }
   0x9   :  { %20 = vsyncpa [#allocation4], 0 }
   0xa   :  { %22 = vsyncpa [#allocation4 + $0x1], 0 }
   0xb   :  { %23 = vsyncpa [#allocation7], 0 }
   0xc   :  { %24 = vsyncpa [#allocation10], 0 }
   0xd   :  { %25 = vsyncpa [#allocation13], 0 }
   0xe   :  { %26 = vsyncpa [#allocation16], 0 }
   0xf   :  { %27 = vsyncpa [#allocation5], 0 }
  0x10   :  { %29 = vsyncpa [#allocation5 + $0x1], 0  ;;  %s4855_s18 = smov 0   ;;  %s4857_s19 = smov 0  }
  0x11   :  { %s4859_s20 = smov 0   ;;  %s4861_s21 = smov 0  }
  0x12 LB: > { %s4754_s22 = smov [#allocation6]   ;;  %s4876_s24 = sadd.s32 4294967295, %s4752_s21   ;;  %s4752_s21 = sphi %s4861_s21, %s5752_s21   ;;  %s4748_s20 = sphi %s4859_s20, %s5751_s20   ;;  %s4744_s19 = sphi %s4857_s19, %s5750_s19   ;;  %s4740_s18 = sphi %s4855_s18, %s5749_s18  }
  0x13   : > { %s398_s23 = sshll.u32 %s4754_s22, 4  ;;  %p3523_p0 = scmp.ge.s32.totalorder %s4752_s21, 1  ;;  %s4881_s23 = int_to_ptr.vmem [resolvable:$true] %s398_s23 }
  0x14   : > { %p5709_p1 = scmp.eq.s32.totalorder %s4876_s24, 0  ;;  %p386_p2 = scmp.lt.s32.totalorder %s4752_s21, 3 }
  0x15   : > { %s4755_s26 = smov [#allocation9]   ;;  %s4756_s29 = smov [#allocation12]  }
  0x16   : > { %p4883_p3 = pnand %p3523_p0, %p386_p2  ;;  %s424_s27 = sshll.u32 %s4755_s26, 4  ;;  %s4896_s27 = int_to_ptr.vmem [resolvable:$true] %s424_s27 }
  0x17   : > { %s456_s30 = sshll.u32 %s4756_s29, 4  ;;  %s5722_s1 = sld [smem:[#allocation25_spill]]  ;;  %s4898_s30 = int_to_ptr.vmem [resolvable:$true] %s456_s30 }
  0x18   : > { %s5720_s25 = scalar_select %p4883_p3, 1, 0 }
  0x19   : > { %p4180_p5 = pneg %p4883_p3 }
  0x1b   : > { %p4892_p6 = pnand %p4180_p5, %p5709_p1 }
  0x1d   : > { %s4416_s22 = scalar_lea.hbm %s5722_s1, 1024  ;;  %p4908_p8 = pneg %p4892_p6 }
  0x1e   : > { %p4417_p7 = scmp.ne.s32.totalorder %s5722_s1, %s4416_s22  ;;  %p4423_p11 = scmp.lt.u32.totalorder %s4416_s22, %s5722_s1 }
  0x20   : > { %p4419_p9 = pnand %p4908_p8, %p4417_p7 }
  0x22   : > { %p4420_p10 = pneg %p4419_p9 }
  0x24   : > { %p4425_p12 = pnand %p4423_p11, %p4420_p10 }
  0x26   : > { %4428 = shalt.err (!%p4425_p12)
}
  0x27   : > { %s4429_s14 = scalar_lea.vmem %s4881_s23, 1024  ;;  %p4437_p5 = scmp.lt.s32.totalorder %s4881_s23, %s4881_s23 }
  0x28   : > { %p4430_p13 = scmp.ne.s32.totalorder %s4881_s23, %s4429_s14  ;;  %p4438_p4 = scmp.lt.s32.totalorder %s4429_s14, %s4429_s14 }
  0x2a   : > { %p4432_p0 = pnand %p4430_p13, %p4908_p8  ;;  %p4439_p7 = por %p4438_p4, %p4437_p5 }
  0x2c   : > { %p4433_p2 = pneg %p4432_p0 }
  0x2e   : > { %p4440_p9 = pnand %p4439_p7, %p4433_p2 }
  0x30   : > { %4443 = shalt.err (!%p4440_p9)
}
  0x31   : > { %s4757_s15 = smov 64   ;;  %s4758_s13 = smov 4  }
  0x32   : > { %4183 = dma.hbm_to_vmem [thread:$0]  (!%p4892_p6), %s5722_s1, 1024, %s4881_s23, [#allocation7], %s4757_s15, %s4757_s15, %s4758_s13  }
  0x33   : > { %s4444_s14 = scalar_lea.hbm %s5695_s3, 1024 }
  0x34   : > { %p4445_p4 = scmp.ne.s32.totalorder %s5695_s3, %s4444_s14  ;;  %p4451_p12 = scmp.lt.u32.totalorder %s4444_s14, %s5695_s3 }
  0x36   : > { %p4447_p10 = pnand %p4445_p4, %p4908_p8 }
  0x38   : > { %p4448_p11 = pneg %p4447_p10 }
  0x3a   : > { %p4453_p13 = pnand %p4451_p12, %p4448_p11 }
  0x3c   : > { %4456 = shalt.err (!%p4453_p13)
}
  0x3d   : > { %s4457_s23 = scalar_lea.vmem %s4896_s27, 1024  ;;  %p4465_p7 = scmp.lt.s32.totalorder %s4896_s27, %s4896_s27 }
  0x3e   : > { %p4458_p0 = scmp.ne.s32.totalorder %s4896_s27, %s4457_s23  ;;  %p4466_p9 = scmp.lt.s32.totalorder %s4457_s23, %s4457_s23 }
  0x40   : > { %p4460_p2 = pnand %p4458_p0, %p4908_p8  ;;  %p4467_p4 = por %p4466_p9, %p4465_p7 }
  0x42   : > { %p4461_p5 = pneg %p4460_p2 }
  0x44   : > { %p4468_p10 = pnand %p4467_p4, %p4461_p5 }
  0x46   : > { %4471 = shalt.err (!%p4468_p10)
}
  0x47   : > { %4189 = dma.hbm_to_vmem [thread:$0]  (!%p4892_p6), %s5695_s3, 1024, %s4896_s27, [#allocation10], %s4757_s15, %s4757_s15, %s4758_s13  }
  0x48   : > { %s4472_s16 = scalar_lea.hbm %s5699_s7, 1024 }
  0x49   : > { %p4473_p11 = scmp.ne.s32.totalorder %s5699_s7, %s4472_s16  ;;  %p4479_p0 = scmp.lt.u32.totalorder %s4472_s16, %s5699_s7 }
  0x4b   : > { %p4475_p12 = pnand %p4473_p11, %p4908_p8 }
  0x4d   : > { %p4476_p13 = pneg %p4475_p12 }
  0x4f   : > { %p4481_p2 = pnand %p4479_p0, %p4476_p13 }
  0x51   : > { %4484 = shalt.err (!%p4481_p2)
}
  0x52   : > { %s4485_s27 = scalar_lea.vmem %s4898_s30, 1024  ;;  %p4493_p4 = scmp.lt.s32.totalorder %s4898_s30, %s4898_s30 }
  0x53   : > { %p4486_p5 = scmp.ne.s32.totalorder %s4898_s30, %s4485_s27  ;;  %p4494_p10 = scmp.lt.s32.totalorder %s4485_s27, %s4485_s27 }
  0x55   : > { %p4488_p7 = pnand %p4486_p5, %p4908_p8  ;;  %p4495_p11 = por %p4494_p10, %p4493_p4 }
  0x57   : > { %p4489_p9 = pneg %p4488_p7 }
  0x59   : > { %p4496_p12 = pnand %p4495_p11, %p4489_p9 }
  0x5b   : > { %4499 = shalt.err (!%p4496_p12)
}
  0x5c   : > { %4195 = dma.hbm_to_vmem [thread:$0]  (!%p4892_p6), %s5699_s7, 1024, %s4898_s30, [#allocation13], %s4757_s15, %s4757_s15, %s4758_s13  }
  0x5d   : > { %s4759_s6 = smov [#allocation15]   ;;  %s4760_s12 = smov [#allocation8]  }
  0x5e   : > { %s482_s10 = sshll.u32 %s4759_s6, 4  ;;  %s411_s16 = sshll.u32 %s4760_s12, 4  ;;  %s483_s10 = int_to_ptr.vmem [resolvable:$true] %s482_s10  ;;  %s412_s16 = int_to_ptr.vmem [resolvable:$true] %s411_s16 }
  0x5f   : > { %s4500_s29 = scalar_lea.hbm %s5701_s9, 1024 }
  0x60   : > { %p4501_p13 = scmp.ne.s32.totalorder %s5701_s9, %s4500_s29  ;;  %p4507_p5 = scmp.lt.u32.totalorder %s4500_s29, %s5701_s9 }
  0x62   : > { %p4503_p0 = pnand %p4501_p13, %p4908_p8 }
  0x64   : > { %p4504_p2 = pneg %p4503_p0 }
  0x66   : > { %p4509_p7 = pnand %p4507_p5, %p4504_p2 }
  0x68   : > { %4512 = shalt.err (!%p4509_p7)
}
  0x69   : > { %s4513_s30 = scalar_lea.vmem %s483_s10, 1024  ;;  %p4521_p11 = scmp.lt.s32.totalorder %s483_s10, %s483_s10 }
  0x6a   : > { %p4514_p9 = scmp.ne.s32.totalorder %s483_s10, %s4513_s30  ;;  %p4522_p12 = scmp.lt.s32.totalorder %s4513_s30, %s4513_s30 }
  0x6c   : > { %p4516_p4 = pnand %p4514_p9, %p4908_p8  ;;  %p4523_p1 = por %p4522_p12, %p4521_p11 }
  0x6e   : > { %p4517_p10 = pneg %p4516_p4 }
  0x70   : > { %p4524_p3 = pnand %p4523_p1, %p4517_p10 }
  0x72   : > { %4527 = shalt.err (!%p4524_p3)
}
  0x73   : > { %4201 = dma.hbm_to_vmem [thread:$0]  (!%p4892_p6), %s5701_s9, 1024, %s483_s10, [#allocation16], %s4757_s15, %s4757_s15, %s4758_s13  }
  0x74   : > { %s4528_s17 = scalar_lea.hbm %s5694_s2, 1024 }
  0x75   : > { %p4529_p1 = scmp.ne.s32.totalorder %s5694_s2, %s4528_s17  ;;  %p4535_p0 = scmp.lt.u32.totalorder %s4528_s17, %s5694_s2 }
  0x77   : > { %p4531_p3 = pnand %p4529_p1, %p4908_p8 }
  0x79   : > { %p4532_p13 = pneg %p4531_p3 }
  0x7b   : > { %p4537_p2 = pnand %p4535_p0, %p4532_p13 }
  0x7d   : > { %4540 = shalt.err (!%p4537_p2)
}
  0x7e   : > { %s4541_s23 = scalar_lea.vmem %s412_s16, 1024  ;;  %p4549_p4 = scmp.lt.s32.totalorder %s412_s16, %s412_s16 }
  0x7f   : > { %p4542_p5 = scmp.ne.s32.totalorder %s412_s16, %s4541_s23  ;;  %p4550_p10 = scmp.lt.s32.totalorder %s4541_s23, %s4541_s23 }
  0x81   : > { %p4544_p7 = pnand %p4542_p5, %p4908_p8  ;;  %p4551_p11 = por %p4550_p10, %p4549_p4 }
  0x83   : > { %p4545_p9 = pneg %p4544_p7 }
  0x85   : > { %p4552_p12 = pnand %p4551_p11, %p4545_p9 }
  0x87   : > { %4555 = shalt.err (!%p4552_p12)
}
  0x88   : > { %4186 = dma.hbm_to_vmem [thread:$0]  (!%p4892_p6), %s5694_s2, 1024, %s412_s16, [#allocation7], %s4757_s15, %s4757_s15, %s4758_s13  }
  0x89   : > { %s4761_s1 = smov [#allocation11]   ;;  %s4762_s6 = smov [#allocation14]  }
  0x8a   : > { %s440_s4 = sshll.u32 %s4761_s1, 4  ;;  %s469_s12 = sshll.u32 %s4762_s6, 4  ;;  %s441_s4 = int_to_ptr.vmem [resolvable:$true] %s440_s4  ;;  %s470_s12 = int_to_ptr.vmem [resolvable:$true] %s469_s12 }
  0x8b   : > { %s4556_s29 = scalar_lea.hbm %s5697_s5, 1024 }
  0x8c   : > { %p4557_p1 = scmp.ne.s32.totalorder %s5697_s5, %s4556_s29  ;;  %p4563_p0 = scmp.lt.u32.totalorder %s4556_s29, %s5697_s5 }
  0x8e   : > { %p4559_p3 = pnand %p4557_p1, %p4908_p8 }
  0x90   : > { %p4560_p13 = pneg %p4559_p3 }
  0x92   : > { %p4565_p2 = pnand %p4563_p0, %p4560_p13 }
  0x94   : > { %4568 = shalt.err (!%p4565_p2)
}
  0x95   : > { %s4569_s16 = scalar_lea.vmem %s441_s4, 1024  ;;  %p4577_p4 = scmp.lt.s32.totalorder %s441_s4, %s441_s4 }
  0x96   : > { %p4570_p5 = scmp.ne.s32.totalorder %s441_s4, %s4569_s16  ;;  %p4578_p10 = scmp.lt.s32.totalorder %s4569_s16, %s4569_s16 }
  0x98   : > { %p4572_p7 = pnand %p4570_p5, %p4908_p8  ;;  %p4579_p11 = por %p4578_p10, %p4577_p4 }
  0x9a   : > { %p4573_p9 = pneg %p4572_p7 }
  0x9c   : > { %p4580_p12 = pnand %p4579_p11, %p4573_p9 }
  0x9e   : > { %4583 = shalt.err (!%p4580_p12)
}
  0x9f   : > { %4192 = dma.hbm_to_vmem [thread:$0]  (!%p4892_p6), %s5697_s5, 1024, %s441_s4, [#allocation10], %s4757_s15, %s4757_s15, %s4758_s13  }
  0xa0   : > { %s4584_s22 = scalar_lea.hbm %s5700_s8, 1024 }
  0xa1   : > { %p4585_p1 = scmp.ne.s32.totalorder %s5700_s8, %s4584_s22  ;;  %p4591_p0 = scmp.lt.u32.totalorder %s4584_s22, %s5700_s8 }
  0xa3   : > { %p4587_p3 = pnand %p4585_p1, %p4908_p8 }
  0xa5   : > { %p4588_p13 = pneg %p4587_p3 }
  0xa7   : > { %p4593_p2 = pnand %p4591_p0, %p4588_p13 }
  0xa9   : > { %4596 = shalt.err (!%p4593_p2)
}
  0xaa   : > { %s4597_s10 = scalar_lea.vmem %s470_s12, 1024  ;;  %p4605_p4 = scmp.lt.s32.totalorder %s470_s12, %s470_s12 }
  0xab   : > { %p4598_p5 = scmp.ne.s32.totalorder %s470_s12, %s4597_s10  ;;  %p4606_p10 = scmp.lt.s32.totalorder %s4597_s10, %s4597_s10 }
  0xad   : > { %p4600_p7 = pnand %p4598_p5, %p4908_p8  ;;  %p4607_p11 = por %p4606_p10, %p4605_p4 }
  0xaf   : > { %p4601_p9 = pneg %p4600_p7 }
  0xb1   : > { %p4608_p12 = pnand %p4607_p11, %p4601_p9 }
  0xb3   : > { %4611 = shalt.err (!%p4608_p12)
}
  0xb4   : > { %4198 = dma.hbm_to_vmem [thread:$0]  (!%p4892_p6), %s5700_s8, 1024, %s470_s12, [#allocation13], %s4757_s15, %s4757_s15, %s4758_s13  }
  0xb5   : > { %s4763_s30 = smov [#allocation17]   ;;  %s4612_s22 = scalar_lea.hbm %s5703_s11, 1024 }
  0xb6   : > { %s498_s1 = sshll.u32 %s4763_s30, 4  ;;  %p4613_p1 = scmp.ne.s32.totalorder %s5703_s11, %s4612_s22  ;;  %s499_s1 = int_to_ptr.vmem [resolvable:$true] %s498_s1 }
  0xb7   : > { %p4619_p0 = scmp.lt.u32.totalorder %s4612_s22, %s5703_s11 }
  0xb8   : > { %p4615_p3 = pnand %p4613_p1, %p4908_p8 }
  0xba   : > { %p4616_p13 = pneg %p4615_p3 }
  0xbc   : > { %p4621_p2 = pnand %p4619_p0, %p4616_p13 }
  0xbe   : > { %4624 = shalt.err (!%p4621_p2)
}
  0xbf   : > { %s4625_s12 = scalar_lea.vmem %s499_s1, 1024  ;;  %p4633_p4 = scmp.lt.s32.totalorder %s499_s1, %s499_s1 }
  0xc0   : > { %p4626_p5 = scmp.ne.s32.totalorder %s499_s1, %s4625_s12  ;;  %p4634_p10 = scmp.lt.s32.totalorder %s4625_s12, %s4625_s12 }
  0xc2   : > { %p4628_p7 = pnand %p4626_p5, %p4908_p8  ;;  %p4635_p11 = por %p4634_p10, %p4633_p4 }
  0xc4   : > { %p4629_p9 = pneg %p4628_p7 }
  0xc6   : > { %p4636_p12 = pnand %p4635_p11, %p4629_p9 }
  0xc8   : > { %4639 = shalt.err (!%p4636_p12)
}
  0xc9   : > { %4204 = dma.hbm_to_vmem [thread:$0]  (!%p4892_p6), %s5703_s11, 1024, %s499_s1, [#allocation16], %s4757_s15, %s4757_s15, %s4758_s13  }
  0xca   : > { %s3522_s28 = sadd.s32 4294967294, %s4752_s21   ;;  %s5091_s26 = sadd.s32 1, %s4752_s21  }
  0xcb   : > { %s39_s16 = ssub.s32 %s4752_s21, %s5091_s26  ;;  %s42_s30 = sadd.s32 1, %s4748_s20 }
  0xcc   : > { %p40_p8 = scmp.eq.s32.totalorder %s39_s16, 0  ;;  %p49_p1 = scmp.ne.s32.totalorder %s4748_s20, %s4744_s19 }
  0xcd   : > { %p50_p3 = scmp.eq.s32.totalorder %s4752_s21, 0  ;;  %p55_p13 = scmp.ne.s32.totalorder %s4744_s19, %s4740_s18 }
  0xce   : > { %s5102_s6 = scalar_select %p40_p8, %s4748_s20, %s42_s30  }
  0xcf   : > { %p5104_p0 = por %p50_p3, %p49_p1  ;;  %p5725_p2 = scmp.eq.s32.totalorder %s4876_s24, 0 }
  0xd0   : > { %p373_p5 = scmp.eq.s32.totalorder %s4876_s24, 1  ;;  %p379_p7 = scmp.eq.s32.totalorder %s3522_s28, 1 }
  0xd1   : > { %p5110_p6 = por %p5725_p2, %p55_p13  ;;  %p4221_p9 = scmp.lt.s32.totalorder %s4752_s21, 2 }
  0xd2   : > { %s521_s13 = sand.u32 1, %s4748_s20   ;;  %p5117_p4 = por %p373_p5, %p49_p1 }
  0xd3   : > { %p5121_p10 = por %p379_p7, %p55_p13  ;;  %s3533_s29 = sshll.u32 %s521_s13, 4 }
  0xd4   : > { %s5727_s1 = scalar_select %p5117_p4, 1, 0 }
  0xd5   : > { %s5728_s22 = scalar_select %p5121_p10, 1, 0 }
  0xd6   : > { %s3654_s14 = sshll.u32 %s4752_s21, 8  ;;  %s525_s10 = scalar_lea.vmem [#allocation3], %s3533_s29 }
  0xd7   : > { %s5129_s12 = scalar_lea.hbm %s5692_s0, %s3654_s14  ;;  %s532_s4 = sshll.u32 %s525_s10, 4  ;;  %s5131_s4 = int_to_ptr.vmem [resolvable:$true] %s532_s4 }
  0xd8   : > { %p5135_p11 = pnand %p4221_p9, %p5104_p0  ;;  %s5139_s16 = scalar_lea.sflag [#allocation4], %s521_s13 }
  0xd9   : > { %s4640_s30 = scalar_lea.hbm %s5129_s12, 256  ;;  %s4645_s17 = scalar_lea.hbm %s5692_s0, 512 }
  0xda   : > { %p4641_p12 = scmp.ne.s32.totalorder %s5129_s12, %s4640_s30  ;;  %p4642_p8 = pneg %p5135_p11 }
  0xdb   : > { %p4646_p13 = scmp.lt.u32.totalorder %s5129_s12, %s5692_s0  ;;  %p4647_p0 = scmp.lt.u32.totalorder %s4645_s17, %s4640_s30 }
  0xdc   : > { %p4643_p1 = pnand %p4642_p8, %p4641_p12  ;;  %p4649_p5 = scmp.lt.u32.totalorder %s4640_s30, %s5129_s12 }
  0xdd   : > { %p4648_p2 = por %p4647_p0, %p4646_p13 }
  0xde   : > { %p4644_p3 = pneg %p4643_p1 }
  0xdf   : > { %p4650_p7 = por %p4649_p5, %p4648_p2 }
  0xe1   : > { %p4651_p9 = pnand %p4650_p7, %p4644_p3 }
  0xe3   : > { %4654 = shalt.err (!%p4651_p9)
}
  0xe4   : > { %s4655_s13 = scalar_lea.vmem %s5131_s4, 256  ;;  %s4764_s10 = smov [#allocation3]  }
  0xe5   : > { %p4656_p12 = scmp.ne.s32.totalorder %s5131_s4, %s4655_s13  ;;  %s4660_s29 = sshll.u32 %s4764_s10, 4  ;;  %s4661_s29 = int_to_ptr.vmem [resolvable:$false] %s4660_s29 }
  0xe6   : > { %s4662_s14 = scalar_lea.vmem %s4661_s29, 512  ;;  %p4663_p4 = scmp.lt.s32.totalorder %s5131_s4, %s4661_s29 }
  0xe7   : > { %p4658_p1 = pnand %p4656_p12, %p4642_p8  ;;  %p4664_p13 = scmp.lt.s32.totalorder %s4662_s14, %s4655_s13 }
  0xe9   : > { %p4659_p10 = pneg %p4658_p1  ;;  %p4665_p0 = por %p4664_p13, %p4663_p4 }
  0xeb   : > { %p4666_p2 = pnand %p4665_p0, %p4659_p10 }
  0xed   : > { %4669 = shalt.err (!%p4666_p2)
}
  0xee   : > { %s4765_s30 = smov 128   ;;  %s4766_s17 = smov 8  }
  0xef   : > { %4208 = dma.hbm_to_vmem [thread:$0]  (!%p5135_p11), %s5129_s12, 256, %s5131_s4, %s5139_s16, %s4765_s30, %s4765_s30, %s4766_s17  }
  0xf0   : > { %p5730_p8 = scmp.ne.s32.totalorder %s5720_s25, 0 }
  0xf1   : > { %s5170_s27 = sand.u32 (!%p5730_p8), 1, %s4744_s19  }
  0xf2   : > { %544 = sbr.rel (%p5730_p8) target bundleno = 6478 (0x194e), region = 80  ;;  %s3537_s23 = sshll.u32 (!%p5730_p8), %s5170_s27, 4 }
  0xf3   : > { %s547_s13 = scalar_lea.sflag (!%p5730_p8), [#allocation4], %s5170_s27  ;;  %s5176_s10 = scalar_lea.vmem (!%p5730_p8), [#allocation3], %s3537_s23 }
  0xf9   : > { %4715 = dma.done.wait (%p5110_p6), %s547_s13, 256  }
  0xfa   : > { %4717 = vsyncadd (%p5110_p6), %s547_s13, 4294967040  ;;  %p5731_p4 = scmp.eq.s32.totalorder %s4876_s24, 0 }
  0xfc   : > { %4719 = dma.done.wait (%p5731_p4), [#allocation7], 2048   ;;  %p5732_p10 = pmov %p5731_p4 }
  0xfd   : > { %p5733_p11 = pmov %p5731_p4 }
  0xfe   : > { %4721 = vsyncadd (%p5732_p10), [#allocation7], 4294965248 }
  0xff   : > { %4723 = dma.done.wait (%p5733_p11), [#allocation10], 2048   ;;  %p5734_p3 = pmov %p5731_p4 }
 0x101   : > { %4725 = vsyncadd (%p5734_p3), [#allocation10], 4294965248  ;;  %p5735_p5 = pmov %p5734_p3 }
 0x102   : > { %p5736_p7 = pmov %p5734_p3 }
 0x103   : > { %4727 = dma.done.wait (%p5735_p5), [#allocation13], 2048  }
 0x104   : > { %4729 = vsyncadd (%p5736_p7), [#allocation13], 4294965248  ;;  %p5737_p6 = pmov %p5734_p3 }
 0x105   : > { %p5738_p9 = pmov %p5734_p3 }
 0x106   : > { %4731 = dma.done.wait (%p5737_p6), [#allocation16], 2048  }
 0x107   : > { %4733 = vsyncadd (%p5738_p9), [#allocation16], 4294965248  ;;  %v4767_v0 = vmov 0.0   ;;  %vm4768_vm0 = vmmov 0   ;;  %v4282_v1 = vld [vmem:[#allocation8] sm:$0xff]   ;;  %v4284_v3 = vld [vmem:[#allocation8 + $0x8] sm:$0xff]  }
 0x108   : > { %3812 = vmatprep.subr.bf16.mxu1 %v4767_v0  ;;  %3792 = vmatprep.subr.bf16.mxu0 %v4767_v0  ;;  %v4283_v2 = vld [vmem:[#allocation6] sm:$0xff]   ;;  %v4285_v4 = vld [vmem:[#allocation6 + $0x8] sm:$0xff]   ;;  %v4286_v5 = vld [vmem:[#allocation8 + $0x10] sm:$0xff]   ;;  %s5739_s12 = sld [smem:[#allocation26_spill]]  ;;  %vm963_vm1 = vcmask 261120   ;;  %vm1056_vm2 = vcmask 64512  }
 0x109   : > { %3828 = vmatprep.mubr.msk.bf16.mxu1 %vm4768_vm0, %v4767_v0  ;;  %3808 = vmatprep.mubr.msk.bf16.mxu0 %vm4768_vm0, %v4767_v0  ;;  %v4287_v6 = vld [vmem:[#allocation6 + $0x10] sm:$0xff]   ;;  %v4288_v7 = vld [vmem:[#allocation8 + $0x18] sm:$0xff]   ;;  %v4290_v9 = vld [vmem:[#allocation8 + $0x20] sm:$0xff]   ;;  %s4769_s4 = smov 96   ;;  %vm1084_vm3 = vcmask 1043456   ;;  %s4770_s28 = smov 64  }
 0x10a   : > { %3813 = vmatpush3.bf16.msra.mxu1 %v4282_v1  ;;  %3793 = vmatpush3.bf16.msra.mxu0 %v4283_v2  ;;  %v4289_v8 = vld [vmem:[#allocation6 + $0x18] sm:$0xff]   ;;  %v4291_v10 = vld [vmem:[#allocation6 + $0x20] sm:$0xff]   ;;  %v4292_v11 = vld [vmem:[#allocation8 + $0x28] sm:$0xff]   ;;  %s4771_s16 = smov 32   ;;  %vm1407_vm4 = vcmask 523520   ;;  %vm1634_vm5 = vcmask 785920  }
 0x10b   : > { %3814 = vmatprep.subr.bf16.mxu1 %v4767_v0  ;;  %3794 = vmatprep.subr.bf16.mxu0 %v4767_v0  ;;  %v4293_v12 = vld [vmem:[#allocation6 + $0x28] sm:$0xff]   ;;  %v4294_v13 = vld [vmem:[#allocation8 + $0x30] sm:$0xff]   ;;  %v4296_v15 = vld [vmem:[#allocation8 + $0x38] sm:$0xff]   ;;  %vm1861_vm6 = vcmask 1048320   ;;  %s5740_s30 = sld [smem:[#allocation27_spill]]  ;;  %s3655_s17 = sshll.u32 %s4876_s24, 8 }
 0x10c   : > { %v4295_v14 = vld [vmem:[#allocation6 + $0x30] sm:$0xff]   ;;  %v633_v17 = vld [vmem:[%s5176_s10 + $0x8] sm:$0xff]  ;;  %v4298_v37 = vld [vmem:[#allocation9] sm:$0xff]   ;;  %s628_s13 = scalar_lea.vmem [#allocation18], %s3537_s23  ;;  %p5746_p1 = scmp.ne.s32.totalorder %s5727_s1, 0 }
 0x10d   : > { %v632_v16 = vld [vmem:[%s5176_s10] sm:$0xff]  ;;  %v4297_v18 = vld [vmem:[#allocation6 + $0x38] sm:$0xff]   ;;  %v4299_v38 = vld [vmem:[#allocation9 + $0x8] sm:$0xff]   ;;  %s4772_s24 = smov [#allocation18]  }
 0x10e   : > { %3815 = vmatpush3.bf16.msra.mxu1 %v4284_v3  ;;  %3795 = vmatpush3.bf16.msra.mxu0 %v4285_v4  ;;  %v634_v19 = vpack.c.bf16 %v633_v17, %v632_v16  ;;  %v3547_v21 = vld [vmem:[%s5739_s12] ss:$0 sm:$0xff]  ;;  %v4300_v39 = vld [vmem:[#allocation9 + $0x10] sm:$0xff]   ;;  %v4302_v41 = vld [vmem:[#allocation9 + $0x20] sm:$0xff]   ;;  %s5742_s12 = sld [smem:[#allocation29_spill]]  ;;  %s4674_s23 = sshll.u32 %s4772_s24, 4  ;;  %s4675_s23 = int_to_ptr.vmem [resolvable:$false] %s4674_s23 }
 0x10f   : > { %3816 = vmatprep.subr.bf16.mxu1 %v4767_v0  ;;  %3796 = vmatprep.subr.bf16.mxu0 %v4767_v0  ;;  %v4301_v40 = vld [vmem:[#allocation9 + $0x18] sm:$0xff]   ;;  %v4303_v42 = vld [vmem:[#allocation9 + $0x28] sm:$0xff]   ;;  %v4304_v43 = vld [vmem:[#allocation9 + $0x30] sm:$0xff]   ;;  %s4676_s29 = scalar_lea.vmem %s4675_s23, 512 }
 0x110   : > { %v4305_v44 = vld [vmem:[#allocation9 + $0x38] sm:$0xff]  }
 0x112   : > { %3817 = vmatpush3.bf16.msra.mxu1 %v4286_v5  ;;  %3797 = vmatpush3.bf16.msra.mxu0 %v4287_v6 }
 0x113   : > { %3818 = vmatprep.subr.bf16.mxu1 %v4767_v0  ;;  %3798 = vmatprep.subr.bf16.mxu0 %v4767_v0 }
 0x116   : > { %3819 = vmatpush3.bf16.msra.mxu1 %v4288_v7  ;;  %3799 = vmatpush3.bf16.msra.mxu0 %v4289_v8 }
 0x117   : > { %3820 = vmatprep.subr.bf16.mxu1 %v4767_v0  ;;  %3800 = vmatprep.subr.bf16.mxu0 %v4767_v0 }
 0x11a   : > { %3821 = vmatpush3.bf16.msra.mxu1 %v4290_v9  ;;  %3801 = vmatpush3.bf16.msra.mxu0 %v4291_v10 }
 0x11b   : > { %3822 = vmatprep.subr.bf16.mxu1 %v4767_v0  ;;  %3802 = vmatprep.subr.bf16.mxu0 %v4767_v0 }
 0x11e   : > { %3823 = vmatpush3.bf16.msra.mxu1 %v4292_v11  ;;  %3803 = vmatpush3.bf16.msra.mxu0 %v4293_v12 }
 0x11f   : > { %3824 = vmatprep.subr.bf16.mxu1 %v4767_v0  ;;  %3804 = vmatprep.subr.bf16.mxu0 %v4767_v0 }
 0x122   : > { %3825 = vmatpush3.bf16.msra.mxu1 %v4294_v13  ;;  %3805 = vmatpush3.bf16.msra.mxu0 %v4295_v14 }
 0x123   : > { %3826 = vmatprep.subr.bf16.mxu1 %v4767_v0  ;;  %3806 = vmatprep.subr.bf16.mxu0 %v4767_v0 }
 0x126   : > { %3827 = vmatpush3.bf16.msra.mxu1 %v4296_v15  ;;  %3807 = vmatpush3.bf16.msra.mxu0 %v4297_v18 }
 0x127   : > { %3852 = vmatprep.subr.bf16.mxu1 %v4767_v0  ;;  %3832 = vmatprep.subr.bf16.mxu0 %v4767_v0 }
 0x129   : > { %3829 = vmatmul.mubr.bf16.vlgmr.msra.gmra.mrb[0].mxu1 %v634_v19  ;;  %3809 = vmatmul.mubr.bf16.vlgmr.msra.gmra.mrb[0].mxu0 %v634_v19 }
 0x12a   : > { %3854 = vmatprep.mubr.msk.bf16.mxu1 %vm4768_vm0, %v4767_v0  ;;  %3848 = vmatprep.mubr.msk.bf16.mxu0 %vm4768_vm0, %v4767_v0 }
 0x12b   : > { %3833 = vmatpush3.bf16.msra.mxu0 %v4298_v37 }
 0x12c   : > { %3834 = vmatprep.subr.bf16.mxu0 %v4767_v0 }
 0x12f   : > { %3835 = vmatpush3.bf16.msra.mxu0 %v4299_v38 }
 0x130   : > { %3836 = vmatprep.subr.bf16.mxu0 %v4767_v0 }
 0x133   : > { %3837 = vmatpush3.bf16.msra.mxu0 %v4300_v39 }
 0x134   : > { %3838 = vmatprep.subr.bf16.mxu0 %v4767_v0 }
 0x137   : > { %3839 = vmatpush3.bf16.msra.mxu0 %v4301_v40 }
 0x138   : > { %3840 = vmatprep.subr.bf16.mxu0 %v4767_v0 }
 0x13b   : > { %3841 = vmatpush3.bf16.msra.mxu0 %v4302_v41 }
 0x13c   : > { %3842 = vmatprep.subr.bf16.mxu0 %v4767_v0 }
 0x13f   : > { %3843 = vmatpush3.bf16.msra.mxu0 %v4303_v42 }
 0x140   : > { %3844 = vmatprep.subr.bf16.mxu0 %v4767_v0 }
 0x143   : > { %3845 = vmatpush3.bf16.msra.mxu0 %v4304_v43 }
 0x144   : > { %3846 = vmatprep.subr.bf16.mxu0 %v4767_v0 }
 0x147   : > { %3847 = vmatpush3.bf16.msra.mxu0 %v4305_v44 }
 0x148   : > { %3900 = vmatprep.subr.bf16.mxu0 %v4767_v0 }
 0x14a   : > { %3849 = vmatmul.mubr.bf16.vlgmr.msra.gmra.mrb[4].mxu0 %v634_v19 }
 0x14b   : > { %3902 = vmatprep.mubr.msk.bf16.mxu0 %vm4768_vm0, %v4767_v0 }
 0x1fc   : > { %v845_v20 = vpop.f32.mrb[0].mxu1  ;;  %v740_v24 = vpop.f32.mrb[0].mxu0 }
 0x1fd   : > { %v5229_v22 = vpack.c.bf16 %v845_v20, %v845_v20  ;;  %v3830_v23 = vpop.f32.mrb[1].mxu1  ;;  %v3810_v26 = vpop.f32.mrb[1].mxu0  ;;  %v741_v27 = vadd.f32 %v3547_v21, %v740_v24 }
 0x1fe   : > { %v848_v25 = vpop.f32.mrb[2].mxu1  ;;  %v743_v30 = vpop.f32.mrb[2].mxu0 }
 0x1ff   : > { %v3831_v28 = vpop.f32.mrb[3].mxu1  ;;  %v968_v29 = vsel %vm963_vm1, %v5229_v22, 0  ;;  %v3811_v31 = vpop.f32.mrb[3].mxu0  ;;  %v5234_v32 = vpack.c.bf16 %v848_v25, %v848_v25  ;;  %v5236_v33 = vpack.c.bf16 %v741_v27, %v741_v27  ;;  %v744_v35 = vadd.f32 %v3547_v21, %v743_v30 }
 0x200   : > { %3853 = vmatpush3.bf16.xpose.msra.mxu1 %v968_v29 }
 0x201   : > { %3858 = vmatprep.subr.bf16.mxu1 %v4767_v0  ;;  %v1014_v34 = vsel %vm963_vm1, %v5234_v32, 0  ;;  %v5245_v36 = vpack.c.bf16 %v744_v35, %v744_v35 }
 0x207   : > { %3855 = vmatmul.mubr.msk.bf16.vlgmr.msra.gmra.mrb[4].mxu1 %vm963_vm1, %v5236_v33 }
 0x208   : > { %3859 = vmatpush3.bf16.xpose.msra.mxu1 %v1014_v34  ;;  %3860 = vmatprep.mubr.msk.bf16.mxu1 %vm4768_vm0, %v4767_v0 }
 0x209   : > { %3864 = vmatprep.subr.bf16.mxu1 %v4767_v0 }
 0x20f   : > { %3861 = vmatmul.mubr.msk.bf16.vlgmr.msra.gmra.mrb[8].mxu1 %vm963_vm1, %v5245_v36 }
 0x210   : > { %3866 = vmatprep.mubr.msk.bf16.mxu1 %vm4768_vm0, %v4767_v0 }
 0x21d   : > { %v950_v2 = vpop.f32.mrb[4].mxu0 }
 0x21e   : > { %v3850_v3 = vpop.f32.mrb[5].mxu0  ;;  %v5267_v6 = vpack.c.bf16 %v950_v2, %v950_v2 }
 0x21f   : > { %v953_v4 = vpop.f32.mrb[6].mxu0 }
 0x220   : > { %v3851_v5 = vpop.f32.mrb[7].mxu0  ;;  %v1086_v7 = vsel %vm1084_vm3, %v5267_v6, 0  ;;  %v5278_v12 = vpack.c.bf16 %v953_v4, %v953_v4 }
 0x221   : > { %3865 = vmatpush3.bf16.msra.mxu1 %v1086_v7 }
 0x222   : > { %3870 = vmatprep.subr.bf16.mxu1 %v4767_v0  ;;  %v1132_v14 = vsel %vm1084_vm3, %v5278_v12, 0 }
 0x2da   : > { %v1004_v45 = vpop.f32.mrb[4].mxu1 }
 0x2db   : > { %v3856_v46 = vpop.f32.mrb[5].mxu1  ;;  %v1057_v47 = vsel %vm1056_vm2, %v1004_v45, -inf }
 0x2dc   : > { %1058 = vmax.xlane.f32.xlu0 %v1057_v47  ;;  %v1007_v48 = vpop.f32.mrb[6].mxu1 }
 0x2dd   : > { %v3857_v49 = vpop.f32.mrb[7].mxu1 }
 0x2e2   : > { %v1050_v50 = vpop.f32.mrb[8].mxu1 }
 0x2e3   : > { %v3862_v51 = vpop.f32.mrb[9].mxu1  ;;  %v1060_v52 = vsel %vm1056_vm2, %v1050_v50, -inf }
 0x2e4   : > { %1061 = vmax.xlane.f32.xlu0 %v1060_v52  ;;  %v1053_v53 = vpop.f32.mrb[10].mxu1 }
 0x2e5   : > { %v3863_v54 = vpop.f32.mrb[11].mxu1 }
 0x2fa   : > { %1180 = vrot.lane.b32.xlu0 %v5229_v22, %s4769_s4 }
 0x369   : > { %v1059_v55 = vpop.xlane.xlu0 %1058 }
 0x36a   : > { %v1063_v56 = vsub.f32 %v1004_v45, %v1059_v55 }
 0x36c   : > { %v1065_v57 = vmul.f32 1.442695, %v1063_v56 }
 0x36e   : > { %4346 = vpow2.f32 %v1065_v57 }
 0x371   : > { %v1062_v58 = vpop.xlane.xlu0 %1061 }
 0x372   : > { %v1064_v59 = vsub.f32 %v1050_v50, %v1062_v58 }
 0x374   : > { %v1067_v60 = vmul.f32 1.442695, %v1064_v59 }
 0x375   : > { %v1181_v17 = vpop.permute.xlu0 %1180 }
 0x376   : > { %4348 = vpow2.f32 %v1067_v60  ;;  %v1186_v20 = vsel %vm963_vm1, %v1181_v17, 0 }
 0x378   : > { %v4347_v61 = vpop.eup %4346 }
 0x379   : > { %v1069_v62 = vsel %vm1056_vm2, %v4347_v61, 0.0 }
 0x37a   : > { %1070 = vadd.xlane.f32.xlu1 %v1069_v62 }
 0x380   : > { %v4349_v63 = vpop.eup %4348 }
 0x381   : > { %v1072_v1 = vsel %vm1056_vm2, %v4349_v63, 0.0 }
 0x382   : > { %1073 = vadd.xlane.f32.xlu1 %v1072_v1 }
 0x393   : > { %1177 = vrot.lane.b32.xlu1 %v5236_v33, %s4769_s4 }
 0x397   : > { %1232 = vrot.lane.b32.xlu1 %v5234_v32, %s4769_s4 }
 0x39b   : > { %1229 = vrot.lane.b32.xlu1 %v5245_v36, %s4769_s4 }
 0x407   : > { %v1071_v8 = vpop.xlane.xlu1 %1070 }
 0x408   : > { %4350 = vrcp.f32 %v1071_v8 }
 0x40f   : > { %v1074_v9 = vpop.xlane.xlu1 %1073 }
 0x410   : > { %4352 = vrcp.f32 %v1074_v9 }
 0x412   : > { %v4351_v10 = vpop.eup %4350 }
 0x413   : > { %v1077_v11 = vmul.f32 %v4351_v10, %v4347_v61  ;;  %v1178_v19 = vpop.permute.xlu1 %1177 }
 0x415   : > { %v1079_v13 = vpack.c.bf16 %v1077_v11, %v1077_v11 }
 0x417   : > { %3867 = vmatmul.mubr.msk.bf16.vlgmr.msra.gmra.mrb[12].mxu1 %vm1056_vm2, %v1079_v13  ;;  %v1233_v21 = vpop.permute.xlu1 %1232 }
 0x418   : > { %3871 = vmatpush3.bf16.msra.mxu1 %v1132_v14  ;;  %3872 = vmatprep.mubr.msk.bf16.mxu1 %vm4768_vm0, %v4767_v0  ;;  %v1238_v23 = vsel %vm963_vm1, %v1233_v21, 0 }
 0x419   : > { %3876 = vmatprep.subr.bf16.mxu1 %v4767_v0 }
 0x41a   : > { %v4353_v15 = vpop.eup %4352 }
 0x41b   : > { %v1078_v16 = vmul.f32 %v4353_v15, %v4349_v63  ;;  %v1230_v24 = vpop.permute.xlu1 %1229 }
 0x41d   : > { %v1080_v18 = vpack.c.bf16 %v1078_v16, %v1078_v16 }
 0x41f   : > { %3873 = vmatmul.mubr.msk.bf16.vlgmr.msra.gmra.mrb[16].mxu1 %vm1056_vm2, %v1080_v18 }
 0x420   : > { %3878 = vmatprep.mubr.msk.bf16.mxu1 %vm4768_vm0, %v4767_v0 }
 0x421   : > { %3877 = vmatpush3.bf16.xpose.msra.mxu1 %v1186_v20 }
 0x422   : > { %3882 = vmatprep.subr.bf16.mxu1 %v4767_v0 }
 0x428   : > { %3879 = vmatmul.mubr.msk.bf16.vlgmr.msra.gmra.mrb[20].mxu1 %vm963_vm1, %v1178_v19 }
 0x429   : > { %3883 = vmatpush3.bf16.xpose.msra.mxu1 %v1238_v23  ;;  %3884 = vmatprep.mubr.msk.bf16.mxu1 %vm4768_vm0, %v4767_v0 }
 0x42a   : > { %3888 = vmatprep.subr.bf16.mxu1 %v4767_v0 }
 0x430   : > { %3885 = vmatmul.mubr.msk.bf16.vlgmr.msra.gmra.mrb[24].mxu1 %vm963_vm1, %v1230_v24 }
 0x431   : > { %3890 = vmatprep.mubr.msk.bf16.mxu1 %vm4768_vm0, %v4767_v0 }
 0x4ea   : > { %v1122_v25 = vpop.f32.mrb[12].mxu1 }
 0x4eb   : > { %v3868_v26 = vpop.f32.mrb[13].mxu1 }
 0x4ec   : > { %v1125_v27 = vpop.f32.mrb[14].mxu1 }
 0x4ed   : > { %v3869_v28 = vpop.f32.mrb[15].mxu1 }
 0x4f2   : > { %v1168_v29 = vpop.f32.mrb[16].mxu1 }
 0x4f3   : > { %v1174_v30 = vpack.c.bf16 %v1168_v29, %v1122_v25  ;;  %v3874_v31 = vpop.f32.mrb[17].mxu1 }
 0x4f4   : > { %v1171_v34 = vpop.f32.mrb[18].mxu1 }
 0x4f5   : > { %1175 = vst.msk [vmem:[#allocation2] sm:$0xff] %vm963_vm1, %v1174_v30  ;;  %v3875_v35 = vpop.f32.mrb[19].mxu1 }
 0x4fb   : > { %v1222_v37 = vpop.f32.mrb[20].mxu1 }
 0x4fc   : > { %v3880_v38 = vpop.f32.mrb[21].mxu1  ;;  %v1280_v39 = vsel %vm1056_vm2, %v1222_v37, -inf }
 0x4fd   : > { %1281 = vmax.xlane.f32.xlu0 %v1280_v39  ;;  %v1225_v40 = vpop.f32.mrb[22].mxu1 }
 0x4fe   : > { %v3881_v41 = vpop.f32.mrb[23].mxu1 }
 0x503   : > { %v1274_v42 = vpop.f32.mrb[24].mxu1 }
 0x504   : > { %v3886_v43 = vpop.f32.mrb[25].mxu1  ;;  %v1283_v44 = vsel %vm1056_vm2, %v1274_v42, -inf }
 0x505   : > { %1284 = vmax.xlane.f32.xlu1 %v1283_v44  ;;  %v1277_v45 = vpop.f32.mrb[26].mxu1 }
 0x506   : > { %v3887_v46 = vpop.f32.mrb[27].mxu1 }
 0x516   : > { %1354 = vrot.lane.b32.xlu1 %v5278_v12, %s4769_s4 }
 0x51a   : > { %1411 = vrot.lane.b32.xlu1 %v5229_v22, %s4770_s28 }
 0x51e   : > { %1461 = vrot.lane.b32.xlu1 %v5234_v32, %s4770_s28 }
 0x522   : > { %1459 = vrot.lane.b32.xlu1 %v5245_v36, %s4770_s28 }
 0x58a   : > { %v1282_v47 = vpop.xlane.xlu0 %1281 }
 0x58b   : > { %v1286_v48 = vsub.f32 %v1222_v37, %v1282_v47 }
 0x58d   : > { %v1288_v49 = vmul.f32 1.442695, %v1286_v48 }
 0x58f   : > { %4354 = vpow2.f32 %v1288_v49 }
 0x592   : > { %v1285_v50 = vpop.xlane.xlu1 %1284 }
 0x593   : > { %v1287_v51 = vsub.f32 %v1274_v42, %v1285_v50 }
 0x595   : > { %v1290_v52 = vmul.f32 1.442695, %v1287_v51 }
 0x596   : > { %v1355_v53 = vpop.permute.xlu1 %1354 }
 0x597   : > { %4356 = vpow2.f32 %v1290_v52  ;;  %v1360_v5 = vsel %vm1084_vm3, %v1355_v53, 0 }
 0x599   : > { %v4355_v54 = vpop.eup %4354 }
 0x59a   : > { %v1412_v55 = vpop.permute.xlu1 %1411  ;;  %v1292_v56 = vsel %vm1056_vm2, %v4355_v54, 0.0 }
 0x59b   : > { %v1417_v57 = vsel %vm963_vm1, %v1412_v55, 0  ;;  %1293 = vadd.xlane.f32.xlu0 %v1292_v56 }
 0x59c   : > { %3901 = vmatpush3.bf16.xpose.msra.mxu0 %v1417_v57 }
 0x59d   : > { %3912 = vmatprep.subr.bf16.mxu0 %v4767_v0 }
 0x59e   : > { %v1462_v10 = vpop.permute.xlu1 %1461 }
 0x59f   : > { %v1467_v11 = vsel %vm963_vm1, %v1462_v10, 0 }
 0x5a1   : > { %v4357_v58 = vpop.eup %4356 }
 0x5a2   : > { %v1295_v59 = vsel %vm1056_vm2, %v4357_v58, 0.0  ;;  %v1460_v13 = vpop.permute.xlu1 %1459 }
 0x5a3   : > { %1296 = vadd.xlane.f32.xlu0 %v1295_v59 }
 0x5b9   : > { %1305 = vrot.lane.b32.xlu0 %v5267_v6, %s4769_s4 }
 0x5bd   : > { %1409 = vrot.lane.b32.xlu0 %v5236_v33, %s4770_s28 }
 0x628   : > { %v1294_v60 = vpop.xlane.xlu0 %1293 }
 0x629   : > { %4358 = vrcp.f32 %v1294_v60 }
 0x630   : > { %v1297_v61 = vpop.xlane.xlu0 %1296 }
 0x631   : > { %4360 = vrcp.f32 %v1297_v61 }
 0x633   : > { %v4359_v62 = vpop.eup %4358 }
 0x634   : > { %v1300_v63 = vmul.f32 %v4359_v62, %v4355_v54  ;;  %v1306_v1 = vpop.permute.xlu0 %1305 }
 0x635   : > { %v1311_v2 = vsel %vm1084_vm3, %v1306_v1, 0 }
 0x636   : > { %3889 = vmatpush3.bf16.msra.mxu1 %v1311_v2  ;;  %v1302_v3 = vpack.c.bf16 %v1300_v63, %v1300_v63 }
 0x637   : > { %3894 = vmatprep.subr.bf16.mxu1 %v4767_v0 }
 0x638   : > { %v1410_v4 = vpop.permute.xlu0 %1409 }
 0x639   : > { %3891 = vmatmul.mubr.msk.bf16.vlgmr.msra.gmra.mrb[28].mxu1 %vm1056_vm2, %v1302_v3  ;;  %3903 = vmatmul.mubr.msk.bf16.vlgmr.msra.gmra.mrb[8].mxu0 %vm963_vm1, %v1410_v4 }
 0x63a   : > { %3895 = vmatpush3.bf16.msra.mxu1 %v1360_v5  ;;  %3896 = vmatprep.mubr.msk.bf16.mxu1 %vm4768_vm0, %v4767_v0 }
 0x63b   : > { %v4361_v7 = vpop.eup %4360  ;;  %3906 = vmatprep.subr.bf16.mxu1 %v4767_v0  ;;  %3914 = vmatprep.mubr.msk.bf16.mxu0 %vm4768_vm0, %v4767_v0 }
 0x63c   : > { %v1301_v8 = vmul.f32 %v4361_v7, %v4357_v58 }
 0x63e   : > { %v1303_v9 = vpack.c.bf16 %v1301_v8, %v1301_v8 }
 0x641   : > { %3897 = vmatmul.mubr.msk.bf16.vlgmr.msra.gmra.mrb[32].mxu1 %vm1056_vm2, %v1303_v9 }
 0x642   : > { %3908 = vmatprep.mubr.msk.bf16.mxu1 %vm4768_vm0, %v4767_v0 }
 0x643   : > { %3907 = vmatpush3.bf16.xpose.msra.mxu1 %v1467_v11 }
 0x644   : > { %3918 = vmatprep.subr.bf16.mxu1 %v4767_v0 }
 0x64a   : > { %3909 = vmatmul.mubr.msk.bf16.vlgmr.msra.gmra.mrb[36].mxu1 %vm963_vm1, %v1460_v13 }
 0x64b   : > { %3920 = vmatprep.mubr.msk.bf16.mxu1 %vm4768_vm0, %v4767_v0 }
 0x70c   : > { %v5336_v14 = vpop.f32.mrb[28].mxu1  ;;  %v1453_v15 = vpop.f32.mrb[8].mxu0 }
 0x70d   : > { %v3892_v16 = vpop.f32.mrb[29].mxu1  ;;  %v3904_v17 = vpop.f32.mrb[9].mxu0  ;;  %v1509_v18 = vsel %vm1056_vm2, %v1453_v15, -inf }
 0x70e   : > { %v1350_v19 = vpop.f32.mrb[30].mxu1  ;;  %1510 = vmax.xlane.f32.xlu0 %v1509_v18  ;;  %v1456_v20 = vpop.f32.mrb[10].mxu0 }
 0x70f   : > { %v3893_v21 = vpop.f32.mrb[31].mxu1  ;;  %v3905_v23 = vpop.f32.mrb[11].mxu0 }
 0x714   : > { %v5339_v24 = vpop.f32.mrb[32].mxu1 }
 0x715   : > { %v1402_v25 = vpack.c.bf16 %v5339_v24, %v5336_v14  ;;  %v3898_v26 = vpop.f32.mrb[33].mxu1 }
 0x716   : > { %v1399_v27 = vpop.f32.mrb[34].mxu1 }
 0x717   : > { %v3899_v28 = vpop.f32.mrb[35].mxu1 }
 0x71d   : > { %v1503_v29 = vpop.f32.mrb[36].mxu1 }
 0x71e   : > { %v3910_v30 = vpop.f32.mrb[37].mxu1  ;;  %v1512_v31 = vsel %vm1056_vm2, %v1503_v29, -inf }
 0x71f   : > { %1513 = vmax.xlane.f32.xlu1 %v1512_v31  ;;  %v1506_v34 = vpop.f32.mrb[38].mxu1 }
 0x720   : > { %v3911_v35 = vpop.f32.mrb[39].mxu1 }
 0x730   : > { %1581 = vrot.lane.b32.xlu1 %v5278_v12, %s4770_s28 }
 0x734   : > { %1638 = vrot.lane.b32.xlu1 %v5229_v22, %s4771_s16 }
 0x738   : > { %1688 = vrot.lane.b32.xlu1 %v5234_v32, %s4771_s16 }
 0x73c   : > { %1686 = vrot.lane.b32.xlu1 %v5245_v36, %s4771_s16 }
 0x79b   : > { %v1511_v37 = vpop.xlane.xlu0 %1510 }
 0x79c   : > { %v1515_v38 = vsub.f32 %v1453_v15, %v1511_v37 }
 0x79e   : > { %v1517_v39 = vmul.f32 1.442695, %v1515_v38 }
 0x7a0   : > { %4362 = vpow2.f32 %v1517_v39 }
 0x7aa   : > { %v4363_v40 = vpop.eup %4362 }
 0x7ab   : > { %v1521_v41 = vsel %vm1056_vm2, %v4363_v40, 0.0 }
 0x7ac   : > { %v1514_v42 = vpop.xlane.xlu1 %1513  ;;  %1522 = vadd.xlane.f32.xlu0 %v1521_v41 }
 0x7ad   : > { %v1516_v43 = vsub.f32 %v1503_v29, %v1514_v42 }
 0x7af   : > { %v1519_v44 = vmul.f32 1.442695, %v1516_v43 }
 0x7b0   : > { %v1582_v45 = vpop.permute.xlu1 %1581 }
 0x7b1   : > { %4364 = vpow2.f32 %v1519_v44  ;;  %v1587_v22 = vsel %vm1084_vm3, %v1582_v45, 0  ;;  %v4306_v45 = vld [vmem:[#allocation11] sm:$0xff]  }
 0x7b2   : > { %3919 = vmatpush3.bf16.msra.mxu1 %v1587_v22  ;;  %v4307_v22 = vld [vmem:[#allocation11 + $0x8] sm:$0xff]  }
 0x7b3   : > { %3930 = vmatprep.subr.bf16.mxu1 %v4767_v0 }
 0x7b4   : > { %v1639_v52 = vpop.permute.xlu1 %1638 }
 0x7b5   : > { %v1644_v56 = vsel %vm963_vm1, %v1639_v52, 0 }
 0x7b8   : > { %v1689_v55 = vpop.permute.xlu1 %1688 }
 0x7b9   : > { %v1694_v58 = vsel %vm963_vm1, %v1689_v55, 0  ;;  %v4316_v55 = vld [vmem:[#allocation12 + $0x8] sm:$0xff]  }
 0x7bb   : > { %v4365_v32 = vpop.eup %4364 }
 0x7bc   : > { %v1524_v36 = vsel %vm1056_vm2, %v4365_v32, 0.0  ;;  %v1687_v60 = vpop.permute.xlu1 %1686 }
 0x7bd   : > { %1525 = vadd.xlane.f32.xlu0 %v1524_v36  ;;  %v4309_v36 = vld [vmem:[#allocation11 + $0x18] sm:$0xff]  }
 0x7d3   : > { %1533 = vrot.lane.b32.xlu0 %v5267_v6, %s4770_s28 }
 0x7d7   : > { %1636 = vrot.lane.b32.xlu0 %v5236_v33, %s4771_s16 }
 0x839   : > { %v1523_v46 = vpop.xlane.xlu0 %1522 }
 0x83a   : > { %4366 = vrcp.f32 %v1523_v46  ;;  %v4310_v46 = vld [vmem:[#allocation11 + $0x20] sm:$0xff]  }
 0x844   : > { %v4367_v47 = vpop.eup %4366 }
 0x845   : > { %v1529_v49 = vmul.f32 %v4367_v47, %v4363_v40  ;;  %v4311_v47 = vld [vmem:[#allocation11 + $0x28] sm:$0xff]  }
 0x847   : > { %v1531_v53 = vpack.c.bf16 %v1529_v49, %v1529_v49  ;;  %v4313_v49 = vld [vmem:[#allocation11 + $0x38] sm:$0xff]  }
 0x84a   : > { %v1526_v48 = vpop.xlane.xlu0 %1525 }
 0x84b   : > { %4368 = vrcp.f32 %v1526_v48  ;;  %v4312_v48 = vld [vmem:[#allocation11 + $0x30] sm:$0xff]  }
 0x84e   : > { %v1534_v50 = vpop.permute.xlu0 %1533 }
 0x84f   : > { %v1539_v51 = vsel %vm1084_vm3, %v1534_v50, 0 }
 0x850   : > { %3913 = vmatpush3.bf16.msra.mxu0 %v1539_v51 }
 0x851   : > { %3924 = vmatprep.subr.bf16.mxu0 %v4767_v0 }
 0x852   : > { %v1637_v59 = vpop.permute.xlu0 %1636 }
 0x853   : > { %3915 = vmatmul.mubr.msk.bf16.vlgmr.msra.gmra.mrb[12].mxu0 %vm1056_vm2, %v1531_v53  ;;  %v4314_v53 = vld [vmem:[#allocation12] sm:$0xff]  }
 0x854   : > { %3926 = vmatprep.mubr.msk.bf16.mxu0 %vm4768_vm0, %v4767_v0 }
 0x855   : > { %v4369_v33 = vpop.eup %4368 }
 0x856   : > { %v1530_v54 = vmul.f32 %v4369_v33, %v4365_v32  ;;  %v4308_v32 = vld [vmem:[#allocation11 + $0x10] sm:$0xff]  }
 0x858   : > { %v1532_v57 = vpack.c.bf16 %v1530_v54, %v1530_v54 }
 0x859   : > { %3925 = vmatpush3.bf16.xpose.msra.mxu0 %v1644_v56 }
 0x85a   : > { %3921 = vmatmul.mubr.msk.bf16.vlgmr.msra.gmra.mrb[40].mxu1 %vm1056_vm2, %v1532_v57  ;;  %3936 = vmatprep.subr.bf16.mxu0 %v4767_v0 }
 0x85b   : > { %3931 = vmatpush3.bf16.xpose.msra.mxu1 %v1694_v58  ;;  %3932 = vmatprep.mubr.msk.bf16.mxu1 %vm4768_vm0, %v4767_v0 }
 0x85c   : > { %3942 = vmatprep.subr.bf16.mxu1 %v4767_v0 }
 0x860   : > { %3927 = vmatmul.mubr.msk.bf16.vlgmr.msra.gmra.mrb[16].mxu0 %vm963_vm1, %v1637_v59 }
 0x861   : > { %3938 = vmatprep.mubr.msk.bf16.mxu0 %vm4768_vm0, %v4767_v0 }
 0x862   : > { %3933 = vmatmul.mubr.msk.bf16.vlgmr.msra.gmra.mrb[44].mxu1 %vm963_vm1, %v1687_v60  ;;  %v4318_v60 = vld [vmem:[#allocation12 + $0x10] sm:$0xff]  }
 0x863   : > { %3944 = vmatprep.mubr.msk.bf16.mxu1 %vm4768_vm0, %v4767_v0 }
 0x926   : > { %v1575_v61 = vpop.f32.mrb[12].mxu0 }
 0x927   : > { %v3916_v62 = vpop.f32.mrb[13].mxu0 }
 0x928   : > { %v1578_v63 = vpop.f32.mrb[14].mxu0  ;;  %v4322_v62 = vld [vmem:[#allocation12 + $0x20] sm:$0xff]  }
 0x929   : > { %v3917_v1 = vpop.f32.mrb[15].mxu0  ;;  %v4324_v63 = vld [vmem:[#allocation12 + $0x28] sm:$0xff]  }
 0x92d   : > { %v1623_v2 = vpop.f32.mrb[40].mxu1 }
 0x92e   : > { %v1629_v3 = vpack.c.bf16 %v1623_v2, %v1575_v61  ;;  %v3922_v4 = vpop.f32.mrb[41].mxu1  ;;  %v4320_v61 = vld [vmem:[#allocation12 + $0x18] sm:$0xff]   ;;  %v4315_v2 = vld [vmem:[#allocation14] sm:$0xff]  }
 0x92f   : > { %v1626_v5 = vpop.f32.mrb[42].mxu1  ;;  %v4317_v4 = vld [vmem:[#allocation14 + $0x8] sm:$0xff]  }
 0x930   : > { %v3923_v7 = vpop.f32.mrb[43].mxu1  ;;  %v4319_v5 = vld [vmem:[#allocation14 + $0x10] sm:$0xff]  }
 0x931   : > { %v4321_v7 = vld [vmem:[#allocation14 + $0x18] sm:$0xff]  }
 0x933   : > { %v1680_v8 = vpop.f32.mrb[16].mxu0 }
 0x934   : > { %v3928_v9 = vpop.f32.mrb[17].mxu0  ;;  %v1736_v10 = vsel %vm1056_vm2, %v1680_v8, -inf }
 0x935   : > { %v1730_v11 = vpop.f32.mrb[44].mxu1  ;;  %1737 = vmax.xlane.f32.xlu0 %v1736_v10  ;;  %v1683_v13 = vpop.f32.mrb[18].mxu0  ;;  %v4325_v9 = vld [vmem:[#allocation14 + $0x28] sm:$0xff]   ;;  %v4326_v10 = vld [vmem:[#allocation12 + $0x30] sm:$0xff]  }
 0x936   : > { %v3929_v15 = vpop.f32.mrb[19].mxu0  ;;  %v3934_v16 = vpop.f32.mrb[45].mxu1  ;;  %v1739_v17 = vsel %vm1056_vm2, %v1730_v11, -inf  ;;  %v4328_v13 = vld [vmem:[#allocation12 + $0x38] sm:$0xff]  }
 0x937   : > { %1740 = vmax.xlane.f32.xlu1 %v1739_v17  ;;  %v1733_v18 = vpop.f32.mrb[46].mxu1  ;;  %v4329_v15 = vld [vmem:[#allocation14 + $0x38] sm:$0xff]  }
 0x938   : > { %v3935_v19 = vpop.f32.mrb[47].mxu1  ;;  %v3588_v16 = vld [vmem:[%s5740_s30] ss:$0 sm:$0xff]  ;;  %s5744_s30 = sld [smem:[#allocation31_spill]] }
 0x948   : > { %1808 = vrot.lane.b32.xlu1 %v5278_v12, %s4771_s16 }
 0x94c   : > { %1404 = vrot.lane.b32.xlu1 %v1402_v25, %s4771_s16 }
 0x950   : > { %1631 = vrot.lane.b32.xlu1 %v1629_v3, %s4770_s28 }
 0x9c2   : > { %v1738_v20 = vpop.xlane.xlu0 %1737 }
 0x9c3   : > { %v1742_v21 = vsub.f32 %v1680_v8, %v1738_v20  ;;  %v4323_v8 = vld [vmem:[#allocation14 + $0x20] sm:$0xff]  }
 0x9c4   : > { %v1741_v23 = vpop.xlane.xlu1 %1740 }
 0x9c5   : > { %v1744_v26 = vmul.f32 1.442695, %v1742_v21  ;;  %v1743_v27 = vsub.f32 %v1730_v11, %v1741_v23  ;;  %v4327_v11 = vld [vmem:[#allocation14 + $0x30] sm:$0xff]  }
 0x9c7   : > { %4370 = vpow2.f32 %v1744_v26  ;;  %v1746_v28 = vmul.f32 1.442695, %v1743_v27  ;;  %v4414_v26 = vld [vmem:[%s5176_s10] sm:$0xff] }
 0x9c8   : > { %v1809_v29 = vpop.permute.xlu1 %1808 }
 0x9c9   : > { %4372 = vpow2.f32 %v1746_v28  ;;  %v1814_v30 = vsel %vm1084_vm3, %v1809_v29, 0  ;;  %v4415_v28 = vld [vmem:[%s5176_s10 + $0x8] sm:$0xff]  ;;  %s5741_s10 = sld [smem:[#allocation28_spill]] }
 0x9ca   : > { %3943 = vmatpush3.bf16.msra.mxu1 %v1814_v30  ;;  %v4330_v30 = vld [vmem:[#allocation15] sm:$0xff]  }
 0x9cb   : > { %3968 = vmatprep.subr.bf16.mxu1 %v4767_v0 }
 0x9cc   : > { %v1405_v12 = vpop.permute.xlu1 %1404 }
 0x9cd   : > { %1408 = vst.msk [vmem:[#allocation2] sm:$0xff] %vm1407_vm4, %v1405_v12 }
 0x9d0   : > { %v1632_v14 = vpop.permute.xlu1 %1631 }
 0x9d1   : > { %v4371_v24 = vpop.eup %4370  ;;  %1635 = vst.msk [vmem:[#allocation2] sm:$0xff] %vm1634_vm5, %v1632_v14  ;;  %v4331_v14 = vld [vmem:[#allocation15 + $0x8] sm:$0xff]  }
 0x9d2   : > { %v1748_v25 = vsel %vm1056_vm2, %v4371_v24, 0.0 }
 0x9d3   : > { %v4373_v31 = vpop.eup %4372  ;;  %1749 = vadd.xlane.f32.xlu0 %v1748_v25  ;;  %v4333_v25 = vld [vmem:[#allocation15 + $0x18] sm:$0xff]  }
 0x9d4   : > { %v1751_v34 = vsel %vm1056_vm2, %v4373_v31, 0.0 }
 0x9d7   : > { %1752 = vadd.xlane.f32.xlu0 %v1751_v34  ;;  %v4335_v34 = vld [vmem:[#allocation15 + $0x28] sm:$0xff]  }
 0x9ed   : > { %1760 = vrot.lane.b32.xlu0 %v5267_v6, %s4771_s16 }
 0xa60   : > { %v1750_v35 = vpop.xlane.xlu0 %1749 }
 0xa61   : > { %4374 = vrcp.f32 %v1750_v35  ;;  %v4336_v35 = vld [vmem:[#allocation15 + $0x30] sm:$0xff]  }
 0xa64   : > { %v1753_v37 = vpop.xlane.xlu0 %1752 }
 0xa65   : > { %4376 = vrcp.f32 %v1753_v37  ;;  %v4337_v37 = vld [vmem:[#allocation15 + $0x38] sm:$0xff]  }
 0xa68   : > { %v1761_v38 = vpop.permute.xlu0 %1760 }
 0xa69   : > { %v1766_v39 = vsel %vm1084_vm3, %v1761_v38, 0 }
 0xa6a   : > { %3937 = vmatpush3.bf16.msra.mxu0 %v1766_v39 }
 0xa6b   : > { %v4375_v40 = vpop.eup %4374  ;;  %3948 = vmatprep.subr.bf16.mxu0 %v4767_v0 }
 0xa6c   : > { %v1756_v41 = vmul.f32 %v4375_v40, %v4371_v24  ;;  %v4332_v24 = vld [vmem:[#allocation15 + $0x10] sm:$0xff]  }
 0xa6e   : > { %v1758_v42 = vpack.c.bf16 %v1756_v41, %v1756_v41 }
 0xa6f   : > { %v4377_v43 = vpop.eup %4376 }
 0xa70   : > { %v1757_v44 = vmul.f32 %v4377_v43, %v4373_v31  ;;  %3939 = vmatmul.mubr.msk.bf16.vlgmr.msra.gmra.mrb[20].mxu0 %vm1056_vm2, %v1758_v42  ;;  %v4334_v31 = vld [vmem:[#allocation15 + $0x20] sm:$0xff]   ;;  %v3597_v43 = vld [vmem:[%s5741_s10] ss:$0 sm:$0xff]  ;;  %s3373_s10 = sshll.u32 %s628_s13, 4  ;;  %s5648_s10 = int_to_ptr.vmem [resolvable:$true] %s3373_s10 }
 0xa71   : > { %3964 = vmatprep.mubr.msk.bf16.mxu0 %vm4768_vm0, %v4767_v0  ;;  %3949 = vmatpush3.bf16.msra.mxu0 %v4306_v45  ;;  %p4677_p2 = scmp.lt.s32.totalorder %s5648_s10, %s4675_s23 }
 0xa72   : > { %v1759_v6 = vpack.c.bf16 %v1757_v44, %v1757_v44  ;;  %3950 = vmatprep.subr.bf16.mxu0 %v4767_v0 }
 0xa74   : > { %3945 = vmatmul.mubr.msk.bf16.vlgmr.msra.gmra.mrb[48].mxu1 %vm1056_vm2, %v1759_v6 }
 0xa75   : > { %3984 = vmatprep.mubr.msk.bf16.mxu1 %vm4768_vm0, %v4767_v0  ;;  %3951 = vmatpush3.bf16.msra.mxu0 %v4307_v22 }
 0xa76   : > { %3952 = vmatprep.subr.bf16.mxu0 %v4767_v0  ;;  %3969 = vmatpush3.bf16.msra.mxu1 %v4314_v53 }
 0xa77   : > { %3970 = vmatprep.subr.bf16.mxu1 %v4767_v0 }
 0xa79   : > { %3953 = vmatpush3.bf16.msra.mxu0 %v4308_v32 }
 0xa7a   : > { %3954 = vmatprep.subr.bf16.mxu0 %v4767_v0  ;;  %3971 = vmatpush3.bf16.msra.mxu1 %v4316_v55 }
 0xa7b   : > { %3972 = vmatprep.subr.bf16.mxu1 %v4767_v0 }
 0xa7d   : > { %3955 = vmatpush3.bf16.msra.mxu0 %v4309_v36 }
 0xa7e   : > { %3956 = vmatprep.subr.bf16.mxu0 %v4767_v0  ;;  %3973 = vmatpush3.bf16.msra.mxu1 %v4318_v60 }
 0xa7f   : > { %3974 = vmatprep.subr.bf16.mxu1 %v4767_v0 }
 0xa81   : > { %3957 = vmatpush3.bf16.msra.mxu0 %v4310_v46 }
 0xa82   : > { %3958 = vmatprep.subr.bf16.mxu0 %v4767_v0  ;;  %3975 = vmatpush3.bf16.msra.mxu1 %v4320_v61 }
 0xa83   : > { %3976 = vmatprep.subr.bf16.mxu1 %v4767_v0 }
 0xa85   : > { %3959 = vmatpush3.bf16.msra.mxu0 %v4311_v47 }
 0xa86   : > { %3960 = vmatprep.subr.bf16.mxu0 %v4767_v0  ;;  %3977 = vmatpush3.bf16.msra.mxu1 %v4322_v62 }
 0xa87   : > { %3978 = vmatprep.subr.bf16.mxu1 %v4767_v0 }
 0xa89   : > { %3961 = vmatpush3.bf16.msra.mxu0 %v4312_v48 }
 0xa8a   : > { %3962 = vmatprep.subr.bf16.mxu0 %v4767_v0  ;;  %3979 = vmatpush3.bf16.msra.mxu1 %v4324_v63 }
 0xa8b   : > { %3980 = vmatprep.subr.bf16.mxu1 %v4767_v0 }
 0xa8d   : > { %3963 = vmatpush3.bf16.msra.mxu0 %v4313_v49 }
 0xa8e   : > { %3988 = vmatprep.subr.bf16.mxu0 %v4767_v0  ;;  %3981 = vmatpush3.bf16.msra.mxu1 %v4326_v10 }
 0xa8f   : > { %3982 = vmatprep.subr.bf16.mxu1 %v4767_v0 }
 0xa92   : > { %3983 = vmatpush3.bf16.msra.mxu1 %v4328_v13 }
 0xa93   : > { %4008 = vmatprep.subr.bf16.mxu1 %v4767_v0 }
 0xb43   : > { %v1802_v50 = vpop.f32.mrb[20].mxu0 }
 0xb44   : > { %v3940_v51 = vpop.f32.mrb[21].mxu0 }
 0xb45   : > { %v1805_v52 = vpop.f32.mrb[22].mxu0 }
 0xb46   : > { %v3941_v33 = vpop.f32.mrb[23].mxu0 }
 0xb47   : > { %v1850_v54 = vpop.f32.mrb[48].mxu1 }
 0xb48   : > { %v1856_v56 = vpack.c.bf16 %v1850_v54, %v1802_v50  ;;  %v3946_v57 = vpop.f32.mrb[49].mxu1 }
 0xb49   : > { %v1853_v58 = vpop.f32.mrb[50].mxu1 }
 0xb4a   : > { %v3947_v59 = vpop.f32.mrb[51].mxu1  ;;  %1858 = vrot.lane.b32.xlu0 %v1856_v56, %s4769_s4 }
 0xbbc   : > { %v1859_v1 = vpop.permute.xlu0 %1858 }
 0xbbd   : > { %1862 = vst.msk [vmem:[#allocation2] sm:$0xff] %vm1861_vm6, %v1859_v1 }
 0xbc4   : > { %v1863_v3 = vld [vmem:[#allocation2] sm:$0xff] }
 0xbc5   : > { %3965 = vmatmul.mubr.bf16.vlgmr.msra.gmra.mrb[24].mxu0 %v1863_v3 }
 0xbc6   : > { %3989 = vmatpush3.bf16.msra.mxu0 %v4315_v2  ;;  %4004 = vmatprep.mubr.msk.bf16.mxu0 %vm4768_vm0, %v4767_v0 }
 0xbc7   : > { %3990 = vmatprep.subr.bf16.mxu0 %v4767_v0 }
 0xbca   : > { %3991 = vmatpush3.bf16.msra.mxu0 %v4317_v4 }
 0xbcb   : > { %3992 = vmatprep.subr.bf16.mxu0 %v4767_v0 }
 0xbce   : > { %3993 = vmatpush3.bf16.msra.mxu0 %v4319_v5 }
 0xbcf   : > { %3994 = vmatprep.subr.bf16.mxu0 %v4767_v0 }
 0xbd2   : > { %3995 = vmatpush3.bf16.msra.mxu0 %v4321_v7 }
 0xbd3   : > { %3996 = vmatprep.subr.bf16.mxu0 %v4767_v0 }
 0xbd6   : > { %3997 = vmatpush3.bf16.msra.mxu0 %v4323_v8 }
 0xbd7   : > { %3998 = vmatprep.subr.bf16.mxu0 %v4767_v0 }
 0xbda   : > { %3999 = vmatpush3.bf16.msra.mxu0 %v4325_v9 }
 0xbdb   : > { %4000 = vmatprep.subr.bf16.mxu0 %v4767_v0 }
 0xbde   : > { %4001 = vmatpush3.bf16.msra.mxu0 %v4327_v11 }
 0xbdf   : > { %4002 = vmatprep.subr.bf16.mxu0 %v4767_v0 }
 0xbe2   : > { %4003 = vmatpush3.bf16.msra.mxu0 %v4329_v15 }
 0xbe3   : > { %4028 = vmatprep.subr.bf16.mxu0 %v4767_v0 }
 0xc98   : > { %v1969_v17 = vpop.f32.mrb[24].mxu0 }
 0xc99   : > { %v1970_v18 = vadd.f32 %v3588_v16, %v1969_v17  ;;  %v3966_v19 = vpop.f32.mrb[25].mxu0 }
 0xc9a   : > { %v1972_v20 = vpop.f32.mrb[26].mxu0 }
 0xc9b   : > { %v1973_v21 = vadd.f32 %v3588_v16, %v1972_v20  ;;  %v3967_v23 = vpop.f32.mrb[27].mxu0  ;;  %v5435_v27 = vadd.f32 %v4414_v26, %v1970_v18 }
 0xc9d   : > { %v5438_v29 = vadd.f32 %v4415_v28, %v1973_v21 }
 0xc9f   : > { %v1978_v12 = vpack.c.bf16 %v5438_v29, %v5435_v27 }
 0xca1   : > { %3985 = vmatmul.mubr.bf16.vlgmr.msra.gmra.mrb[52].mxu1 %v1978_v12  ;;  %4005 = vmatmul.mubr.bf16.vlgmr.msra.gmra.mrb[28].mxu0 %v1978_v12 }
 0xca2   : > { %4009 = vmatpush3.bf16.msra.mxu1 %v4330_v30  ;;  %4024 = vmatprep.mubr.msk.bf16.mxu1 %vm4768_vm0, %v4767_v0 }
 0xca3   : > { %4010 = vmatprep.subr.bf16.mxu1 %v4767_v0  ;;  %4030 = vmatprep.mubr.msk.bf16.mxu0 %vm4768_vm0, %v4767_v0 }
 0xca6   : > { %4011 = vmatpush3.bf16.msra.mxu1 %v4331_v14 }
 0xca7   : > { %4012 = vmatprep.subr.bf16.mxu1 %v4767_v0 }
 0xcaa   : > { %4013 = vmatpush3.bf16.msra.mxu1 %v4332_v24 }
 0xcab   : > { %4014 = vmatprep.subr.bf16.mxu1 %v4767_v0 }
 0xcae   : > { %4015 = vmatpush3.bf16.msra.mxu1 %v4333_v25 }
 0xcaf   : > { %4016 = vmatprep.subr.bf16.mxu1 %v4767_v0 }
 0xcb2   : > { %4017 = vmatpush3.bf16.msra.mxu1 %v4334_v31 }
 0xcb3   : > { %4018 = vmatprep.subr.bf16.mxu1 %v4767_v0 }
 0xcb6   : > { %4019 = vmatpush3.bf16.msra.mxu1 %v4335_v34 }
 0xcb7   : > { %4020 = vmatprep.subr.bf16.mxu1 %v4767_v0 }
 0xcba   : > { %4021 = vmatpush3.bf16.msra.mxu1 %v4336_v35 }
 0xcbb   : > { %4022 = vmatprep.subr.bf16.mxu1 %v4767_v0 }
 0xcbe   : > { %4023 = vmatpush3.bf16.msra.mxu1 %v4337_v37 }
 0xcbf   : > { %4034 = vmatprep.subr.bf16.mxu1 %v4767_v0 }
 0xcc1   : > { %4025 = vmatmul.mubr.bf16.vlgmr.msra.gmra.mrb[56].mxu1 %v1978_v12 }
 0xcc2   : > { %4036 = vmatprep.mubr.msk.bf16.mxu1 %vm4768_vm0, %v4767_v0 }
 0xd74   : > { %v2084_v38 = vpop.f32.mrb[52].mxu1  ;;  %v2189_v39 = vpop.f32.mrb[28].mxu0 }
 0xd75   : > { %v5456_v40 = vpack.c.bf16 %v2189_v39, %v2189_v39  ;;  %v3986_v41 = vpop.f32.mrb[53].mxu1  ;;  %v4006_v42 = vpop.f32.mrb[29].mxu0  ;;  %v2085_v46 = vadd.f32 %v3597_v43, %v2084_v38 }
 0xd76   : > { %v2087_v44 = vpop.f32.mrb[54].mxu1  ;;  %v2192_v6 = vpop.f32.mrb[30].mxu0 }
 0xd77   : > { %v5461_v45 = vpack.c.bf16 %v2192_v6, %v2192_v6  ;;  %v3987_v22 = vpop.f32.mrb[55].mxu1  ;;  %v4007_v32 = vpop.f32.mrb[31].mxu0  ;;  %v2311_v36 = vsel %vm963_vm1, %v5456_v40, 0  ;;  %v2088_v48 = vadd.f32 %v3597_v43, %v2087_v44  ;;  %v5469_v49 = vpack.c.bf16 %v2085_v46, %v2085_v46 }
 0xd78   : > { %4029 = vmatpush3.bf16.xpose.msra.mxu0 %v2311_v36 }
 0xd79   : > { %v2357_v47 = vsel %vm963_vm1, %v5461_v45, 0  ;;  %4040 = vmatprep.subr.bf16.mxu0 %v4767_v0  ;;  %v5471_v50 = vpack.c.bf16 %v2088_v48, %v2088_v48 }
 0xd7a   : > { %4035 = vmatpush3.bf16.xpose.msra.mxu1 %v2357_v47 }
 0xd7b   : > { %4046 = vmatprep.subr.bf16.mxu1 %v4767_v0 }
 0xd7f   : > { %4031 = vmatmul.mubr.msk.bf16.vlgmr.msra.gmra.mrb[32].mxu0 %vm963_vm1, %v5469_v49 }
 0xd80   : > { %4042 = vmatprep.mubr.msk.bf16.mxu0 %vm4768_vm0, %v4767_v0 }
 0xd81   : > { %4037 = vmatmul.mubr.msk.bf16.vlgmr.msra.gmra.mrb[60].mxu1 %vm963_vm1, %v5471_v50 }
 0xd82   : > { %4048 = vmatprep.mubr.msk.bf16.mxu1 %vm4768_vm0, %v4767_v0 }
 0xd94   : > { %v2294_v51 = vpop.f32.mrb[56].mxu1 }
 0xd95   : > { %v5481_v52 = vpack.c.bf16 %v2294_v51, %v2294_v51  ;;  %v4026_v53 = vpop.f32.mrb[57].mxu1 }
 0xd96   : > { %v2297_v33 = vpop.f32.mrb[58].mxu1 }
 0xd97   : > { %v5483_v54 = vpack.c.bf16 %v2297_v33, %v2297_v33  ;;  %v4027_v55 = vpop.f32.mrb[59].mxu1  ;;  %v2427_v56 = vsel %vm1084_vm3, %v5481_v52, 0 }
 0xd98   : > { %4041 = vmatpush3.bf16.msra.mxu0 %v2427_v56 }
 0xd99   : > { %v2473_v57 = vsel %vm1084_vm3, %v5483_v54, 0  ;;  %4052 = vmatprep.subr.bf16.mxu0 %v4767_v0 }
 0xd9a   : > { %4047 = vmatpush3.bf16.msra.mxu1 %v2473_v57 }
 0xd9b   : > { %4058 = vmatprep.subr.bf16.mxu1 %v4767_v0 }
 0xe52   : > { %v2347_v58 = vpop.f32.mrb[32].mxu0 }
 0xe53   : > { %v4032_v59 = vpop.f32.mrb[33].mxu0  ;;  %v2399_v60 = vsel %vm1056_vm2, %v2347_v58, -inf }
 0xe54   : > { %v2393_v61 = vpop.f32.mrb[60].mxu1  ;;  %2400 = vmax.xlane.f32.xlu1 %v2399_v60  ;;  %v2350_v62 = vpop.f32.mrb[34].mxu0 }
 0xe55   : > { %v4033_v63 = vpop.f32.mrb[35].mxu0  ;;  %v4038_v1 = vpop.f32.mrb[61].mxu1  ;;  %v2402_v2 = vsel %vm1056_vm2, %v2393_v61, -inf }
 0xe56   : > { %2403 = vmax.xlane.f32.xlu0 %v2402_v2  ;;  %v2396_v3 = vpop.f32.mrb[62].mxu1 }
 0xe57   : > { %v4039_v4 = vpop.f32.mrb[63].mxu1 }
 0xe65   : > { %2521 = vrot.lane.b32.xlu1 %v5456_v40, %s4769_s4 }
 0xe69   : > { %2518 = vrot.lane.b32.xlu1 %v5469_v49, %s4769_s4 }
 0xe6d   : > { %2570 = vrot.lane.b32.xlu1 %v5471_v50, %s4769_s4 }
 0xee1   : > { %v2401_v5 = vpop.xlane.xlu1 %2400 }
 0xee2   : > { %v2405_v7 = vsub.f32 %v2347_v58, %v2401_v5 }
 0xee3   : > { %v2404_v8 = vpop.xlane.xlu0 %2403 }
 0xee4   : > { %v2407_v9 = vmul.f32 1.442695, %v2405_v7  ;;  %v2406_v10 = vsub.f32 %v2393_v61, %v2404_v8 }
 0xee5   : > { %v2522_v23 = vpop.permute.xlu1 %2521 }
 0xee6   : > { %4378 = vpow2.f32 %v2407_v9  ;;  %v2409_v11 = vmul.f32 1.442695, %v2406_v10  ;;  %v2527_v30 = vsel %vm963_vm1, %v2522_v23, 0 }
 0xee8   : > { %4380 = vpow2.f32 %v2409_v11 }
 0xee9   : > { %v2519_v31 = vpop.permute.xlu1 %2518 }
 0xeed   : > { %v2571_v34 = vpop.permute.xlu1 %2570 }
 0xef0   : > { %v4379_v13 = vpop.eup %4378 }
 0xef1   : > { %v2411_v15 = vsel %vm1056_vm2, %v4379_v13, 0.0 }
 0xef2   : > { %v4381_v16 = vpop.eup %4380  ;;  %2412 = vadd.xlane.f32.xlu0 %v2411_v15 }
 0xef3   : > { %v2414_v17 = vsel %vm1056_vm2, %v4381_v16, 0.0 }
 0xef6   : > { %2415 = vadd.xlane.f32.xlu0 %v2414_v17 }
 0xf0c   : > { %2573 = vrot.lane.b32.xlu0 %v5461_v45, %s4769_s4 }
 0xf7f   : > { %v2413_v18 = vpop.xlane.xlu0 %2412 }
 0xf80   : > { %4382 = vrcp.f32 %v2413_v18 }
 0xf83   : > { %v2416_v19 = vpop.xlane.xlu0 %2415 }
 0xf84   : > { %4384 = vrcp.f32 %v2416_v19 }
 0xf87   : > { %v2574_v14 = vpop.permute.xlu0 %2573 }
 0xf88   : > { %v2579_v25 = vsel %vm963_vm1, %v2574_v14, 0 }
 0xf8a   : > { %v4383_v20 = vpop.eup %4382 }
 0xf8b   : > { %v2419_v21 = vmul.f32 %v4383_v20, %v4379_v13 }
 0xf8d   : > { %v2421_v26 = vpack.c.bf16 %v2419_v21, %v2419_v21 }
 0xf8e   : > { %v4385_v28 = vpop.eup %4384 }
 0xf8f   : > { %v2420_v12 = vmul.f32 %v4385_v28, %v4381_v16  ;;  %4043 = vmatmul.mubr.msk.bf16.vlgmr.msra.gmra.mrb[36].mxu0 %vm1056_vm2, %v2421_v26 }
 0xf90   : > { %4053 = vmatpush3.bf16.xpose.msra.mxu0 %v2527_v30  ;;  %4054 = vmatprep.mubr.msk.bf16.mxu0 %vm4768_vm0, %v4767_v0 }
 0xf91   : > { %v2422_v24 = vpack.c.bf16 %v2420_v12, %v2420_v12  ;;  %4064 = vmatprep.subr.bf16.mxu0 %v4767_v0 }
 0xf93   : > { %4049 = vmatmul.mubr.msk.bf16.vlgmr.msra.gmra.mrb[64].mxu1 %vm1056_vm2, %v2422_v24 }
 0xf94   : > { %4059 = vmatpush3.bf16.xpose.msra.mxu1 %v2579_v25  ;;  %4060 = vmatprep.mubr.msk.bf16.mxu1 %vm4768_vm0, %v4767_v0 }
 0xf95   : > { %4070 = vmatprep.subr.bf16.mxu1 %v4767_v0 }
 0xf97   : > { %4055 = vmatmul.mubr.msk.bf16.vlgmr.msra.gmra.mrb[40].mxu0 %vm963_vm1, %v2519_v31 }
 0xf98   : > { %4066 = vmatprep.mubr.msk.bf16.mxu0 %vm4768_vm0, %v4767_v0 }
 0xf9b   : > { %4061 = vmatmul.mubr.msk.bf16.vlgmr.msra.gmra.mrb[68].mxu1 %vm963_vm1, %v2571_v34 }
 0xf9c   : > { %4072 = vmatprep.mubr.msk.bf16.mxu1 %vm4768_vm0, %v4767_v0 }
0x1062   : > { %v2463_v35 = vpop.f32.mrb[36].mxu0 }
0x1063   : > { %v4044_v37 = vpop.f32.mrb[37].mxu0 }
0x1064   : > { %v2466_v38 = vpop.f32.mrb[38].mxu0 }
0x1065   : > { %v4045_v39 = vpop.f32.mrb[39].mxu0 }
0x1066   : > { %v2509_v41 = vpop.f32.mrb[64].mxu1 }
0x1067   : > { %v2515_v42 = vpack.c.bf16 %v2509_v41, %v2463_v35  ;;  %v4050_v43 = vpop.f32.mrb[65].mxu1 }
0x1068   : > { %v2512_v44 = vpop.f32.mrb[66].mxu1 }
0x1069   : > { %2516 = vst.msk [vmem:[#allocation2] sm:$0xff] %vm963_vm1, %v2515_v42  ;;  %v4051_v6 = vpop.f32.mrb[67].mxu1 }
0x106a   : > { %v2563_v22 = vpop.f32.mrb[40].mxu0 }
0x106b   : > { %v4056_v32 = vpop.f32.mrb[41].mxu0  ;;  %v2621_v36 = vsel %vm1056_vm2, %v2563_v22, -inf }
0x106c   : > { %2622 = vmax.xlane.f32.xlu1 %v2621_v36  ;;  %v2566_v46 = vpop.f32.mrb[42].mxu0 }
0x106d   : > { %v4057_v47 = vpop.f32.mrb[43].mxu0 }
0x106e   : > { %v2615_v48 = vpop.f32.mrb[68].mxu1 }
0x106f   : > { %v4062_v51 = vpop.f32.mrb[69].mxu1  ;;  %v2624_v53 = vsel %vm1056_vm2, %v2615_v48, -inf }
0x1070   : > { %2625 = vmax.xlane.f32.xlu0 %v2624_v53  ;;  %v2618_v33 = vpop.f32.mrb[70].mxu1 }
0x1071   : > { %v4063_v55 = vpop.f32.mrb[71].mxu1 }
0x107d   : > { %2646 = vrot.lane.b32.xlu1 %v5481_v52, %s4769_s4 }
0x1081   : > { %2751 = vrot.lane.b32.xlu1 %v5456_v40, %s4770_s28 }
0x1085   : > { %2801 = vrot.lane.b32.xlu1 %v5461_v45, %s4770_s28 }
0x1089   : > { %2749 = vrot.lane.b32.xlu1 %v5469_v49, %s4770_s28 }
0x10f9   : > { %v2623_v56 = vpop.xlane.xlu1 %2622 }
0x10fa   : > { %v2627_v57 = vsub.f32 %v2563_v22, %v2623_v56 }
0x10fc   : > { %v2629_v58 = vmul.f32 1.442695, %v2627_v57 }
0x10fd   : > { %v2626_v59 = vpop.xlane.xlu0 %2625  ;;  %v2647_v60 = vpop.permute.xlu1 %2646 }
0x10fe   : > { %4386 = vpow2.f32 %v2629_v58  ;;  %v2628_v61 = vsub.f32 %v2615_v48, %v2626_v59  ;;  %v2652_v62 = vsel %vm1084_vm3, %v2647_v60, 0 }
0x10ff   : > { %4065 = vmatpush3.bf16.msra.mxu0 %v2652_v62 }
0x1100   : > { %v2631_v63 = vmul.f32 1.442695, %v2628_v61  ;;  %4076 = vmatprep.subr.bf16.mxu0 %v4767_v0 }
0x1101   : > { %v2752_v11 = vpop.permute.xlu1 %2751 }
0x1102   : > { %4388 = vpow2.f32 %v2631_v63  ;;  %v2757_v17 = vsel %vm963_vm1, %v2752_v11, 0 }
0x1105   : > { %v2802_v19 = vpop.permute.xlu1 %2801 }
0x1106   : > { %v2807_v21 = vsel %vm963_vm1, %v2802_v19, 0 }
0x1108   : > { %v4387_v1 = vpop.eup %4386 }
0x1109   : > { %v2633_v2 = vsel %vm1056_vm2, %v4387_v1, 0.0  ;;  %v2750_v23 = vpop.permute.xlu1 %2749 }
0x110a   : > { %2634 = vadd.xlane.f32.xlu0 %v2633_v2 }
0x110c   : > { %v4389_v3 = vpop.eup %4388 }
0x110d   : > { %v2636_v4 = vsel %vm1056_vm2, %v4389_v3, 0.0 }
0x110e   : > { %2637 = vadd.xlane.f32.xlu0 %v2636_v4 }
0x1124   : > { %2695 = vrot.lane.b32.xlu0 %v5483_v54, %s4769_s4 }
0x1128   : > { %2799 = vrot.lane.b32.xlu0 %v5471_v50, %s4770_s28 }
0x1197   : > { %v2635_v5 = vpop.xlane.xlu0 %2634 }
0x1198   : > { %4390 = vrcp.f32 %v2635_v5 }
0x119b   : > { %v2638_v7 = vpop.xlane.xlu0 %2637 }
0x119c   : > { %4392 = vrcp.f32 %v2638_v7 }
0x119f   : > { %v2696_v8 = vpop.permute.xlu0 %2695 }
0x11a0   : > { %v2701_v9 = vsel %vm1084_vm3, %v2696_v8, 0 }
0x11a1   : > { %4071 = vmatpush3.bf16.msra.mxu1 %v2701_v9 }
0x11a2   : > { %v4391_v10 = vpop.eup %4390  ;;  %4082 = vmatprep.subr.bf16.mxu1 %v4767_v0 }
0x11a3   : > { %v2641_v13 = vmul.f32 %v4391_v10, %v4387_v1  ;;  %v2800_v26 = vpop.permute.xlu0 %2799 }
0x11a5   : > { %v2643_v15 = vpack.c.bf16 %v2641_v13, %v2641_v13 }
0x11a6   : > { %v4393_v16 = vpop.eup %4392 }
0x11a7   : > { %v2642_v18 = vmul.f32 %v4393_v16, %v4389_v3  ;;  %4067 = vmatmul.mubr.msk.bf16.vlgmr.msra.gmra.mrb[44].mxu0 %vm1056_vm2, %v2643_v15 }
0x11a8   : > { %4077 = vmatpush3.bf16.xpose.msra.mxu0 %v2757_v17  ;;  %4078 = vmatprep.mubr.msk.bf16.mxu0 %vm4768_vm0, %v4767_v0 }
0x11a9   : > { %v2644_v20 = vpack.c.bf16 %v2642_v18, %v2642_v18  ;;  %4088 = vmatprep.subr.bf16.mxu0 %v4767_v0 }
0x11ab   : > { %4073 = vmatmul.mubr.msk.bf16.vlgmr.msra.gmra.mrb[72].mxu1 %vm1056_vm2, %v2644_v20 }
0x11ac   : > { %4083 = vmatpush3.bf16.xpose.msra.mxu1 %v2807_v21  ;;  %4084 = vmatprep.mubr.msk.bf16.mxu1 %vm4768_vm0, %v4767_v0 }
0x11ad   : > { %4094 = vmatprep.subr.bf16.mxu1 %v4767_v0 }
0x11af   : > { %4079 = vmatmul.mubr.msk.bf16.vlgmr.msra.gmra.mrb[48].mxu0 %vm963_vm1, %v2750_v23 }
0x11b0   : > { %4090 = vmatprep.mubr.msk.bf16.mxu0 %vm4768_vm0, %v4767_v0 }
0x11b3   : > { %4085 = vmatmul.mubr.msk.bf16.vlgmr.msra.gmra.mrb[76].mxu1 %vm963_vm1, %v2800_v26 }
0x11b4   : > { %4096 = vmatprep.mubr.msk.bf16.mxu1 %vm4768_vm0, %v4767_v0 }
0x127a   : > { %v5556_v28 = vpop.f32.mrb[44].mxu0 }
0x127b   : > { %v4068_v30 = vpop.f32.mrb[45].mxu0 }
0x127c   : > { %v2691_v12 = vpop.f32.mrb[46].mxu0 }
0x127d   : > { %v4069_v14 = vpop.f32.mrb[47].mxu0 }
0x127e   : > { %v5558_v24 = vpop.f32.mrb[72].mxu1 }
0x127f   : > { %v2743_v25 = vpack.c.bf16 %v5558_v24, %v5556_v28  ;;  %v4074_v31 = vpop.f32.mrb[73].mxu1 }
0x1280   : > { %v2740_v34 = vpop.f32.mrb[74].mxu1 }
0x1281   : > { %v4075_v35 = vpop.f32.mrb[75].mxu1 }
0x1282   : > { %v2793_v37 = vpop.f32.mrb[48].mxu0 }
0x1283   : > { %v4080_v38 = vpop.f32.mrb[49].mxu0  ;;  %v2849_v39 = vsel %vm1056_vm2, %v2793_v37, -inf }
0x1284   : > { %2850 = vmax.xlane.f32.xlu1 %v2849_v39  ;;  %v2796_v41 = vpop.f32.mrb[50].mxu0 }
0x1285   : > { %v4081_v42 = vpop.f32.mrb[51].mxu0 }
0x1286   : > { %v2843_v43 = vpop.f32.mrb[76].mxu1 }
0x1287   : > { %v4086_v44 = vpop.f32.mrb[77].mxu1  ;;  %v2852_v6 = vsel %vm1056_vm2, %v2843_v43, -inf }
0x1288   : > { %2853 = vmax.xlane.f32.xlu0 %v2852_v6  ;;  %v2846_v22 = vpop.f32.mrb[78].mxu1 }
0x1289   : > { %v4087_v32 = vpop.f32.mrb[79].mxu1 }
0x1295   : > { %2873 = vrot.lane.b32.xlu1 %v5481_v52, %s4770_s28 }
0x1299   : > { %2977 = vrot.lane.b32.xlu1 %v5456_v40, %s4771_s16 }
0x129d   : > { %3027 = vrot.lane.b32.xlu1 %v5461_v45, %s4771_s16 }
0x12a1   : > { %2975 = vrot.lane.b32.xlu1 %v5469_v49, %s4771_s16 }
0x1311   : > { %v2851_v36 = vpop.xlane.xlu1 %2850 }
0x1312   : > { %v2855_v46 = vsub.f32 %v2793_v37, %v2851_v36 }
0x1314   : > { %v2857_v47 = vmul.f32 1.442695, %v2855_v46 }
0x1315   : > { %v2854_v48 = vpop.xlane.xlu0 %2853  ;;  %v2874_v51 = vpop.permute.xlu1 %2873 }
0x1316   : > { %4394 = vpow2.f32 %v2857_v47  ;;  %v2856_v53 = vsub.f32 %v2843_v43, %v2854_v48  ;;  %v2879_v33 = vsel %vm1084_vm3, %v2874_v51, 0 }
0x1317   : > { %4089 = vmatpush3.bf16.msra.mxu0 %v2879_v33 }
0x1318   : > { %v2859_v55 = vmul.f32 1.442695, %v2856_v53  ;;  %4100 = vmatprep.subr.bf16.mxu0 %v4767_v0 }
0x1319   : > { %v2978_v62 = vpop.permute.xlu1 %2977 }
0x131a   : > { %4396 = vpow2.f32 %v2859_v55  ;;  %v2983_v3 = vsel %vm963_vm1, %v2978_v62, 0  ;;  %v4345_v62 = vld [vmem:[#allocation17 + $0x38] sm:$0xff]  }
0x1320   : > { %v4395_v40 = vpop.eup %4394 }
0x1321   : > { %v2861_v45 = vsel %vm1056_vm2, %v4395_v40, 0.0 }
0x1322   : > { %2862 = vadd.xlane.f32.xlu0 %v2861_v45 }
0x1324   : > { %v4397_v56 = vpop.eup %4396 }
0x1325   : > { %v2864_v49 = vsel %vm1056_vm2, %v4397_v56, 0.0 }
0x1326   : > { %2865 = vadd.xlane.f32.xlu0 %v2864_v49  ;;  %v4339_v49 = vld [vmem:[#allocation17 + $0x8] sm:$0xff]  }
0x133c   : > { %2921 = vrot.lane.b32.xlu0 %v5483_v54, %s4770_s28 }
0x1340   : > { %3025 = vrot.lane.b32.xlu0 %v5471_v50, %s4771_s16  ;;  %v3028_v50 = vpop.permute.xlu1 %3027 }
0x1341   : > { %v3033_v7 = vsel %vm963_vm1, %v3028_v50, 0 }
0x1344   : > { %v2976_v8 = vpop.permute.xlu1 %2975 }
0x13af   : > { %v2863_v57 = vpop.xlane.xlu0 %2862 }
0x13b0   : > { %4398 = vrcp.f32 %v2863_v57  ;;  %v4340_v57 = vld [vmem:[#allocation17 + $0x10] sm:$0xff]  }
0x13b3   : > { %v2866_v58 = vpop.xlane.xlu0 %2865 }
0x13b4   : > { %4400 = vrcp.f32 %v2866_v58  ;;  %v4341_v58 = vld [vmem:[#allocation17 + $0x18] sm:$0xff]  }
0x13b7   : > { %v2922_v59 = vpop.permute.xlu0 %2921 }
0x13b8   : > { %v2927_v60 = vsel %vm1084_vm3, %v2922_v59, 0  ;;  %v4342_v59 = vld [vmem:[#allocation17 + $0x20] sm:$0xff]  }
0x13b9   : > { %4095 = vmatpush3.bf16.msra.mxu1 %v2927_v60  ;;  %v4343_v60 = vld [vmem:[#allocation17 + $0x28] sm:$0xff]  }
0x13ba   : > { %v4399_v61 = vpop.eup %4398  ;;  %4106 = vmatprep.subr.bf16.mxu1 %v4767_v0 }
0x13bb   : > { %v2869_v63 = vmul.f32 %v4399_v61, %v4395_v40  ;;  %v3026_v9 = vpop.permute.xlu0 %3025  ;;  %v4344_v61 = vld [vmem:[#allocation17 + $0x30] sm:$0xff]  }
0x13bd   : > { %v2871_v1 = vpack.c.bf16 %v2869_v63, %v2869_v63 }
0x13be   : > { %v4401_v2 = vpop.eup %4400 }
0x13bf   : > { %v2870_v4 = vmul.f32 %v4401_v2, %v4397_v56  ;;  %4091 = vmatmul.mubr.msk.bf16.vlgmr.msra.gmra.mrb[52].mxu0 %vm1056_vm2, %v2871_v1 }
0x13c0   : > { %4101 = vmatpush3.bf16.xpose.msra.mxu0 %v2983_v3  ;;  %4102 = vmatprep.mubr.msk.bf16.mxu0 %vm4768_vm0, %v4767_v0 }
0x13c1   : > { %v2872_v5 = vpack.c.bf16 %v2870_v4, %v2870_v4  ;;  %4112 = vmatprep.subr.bf16.mxu0 %v4767_v0 }
0x13c3   : > { %4097 = vmatmul.mubr.msk.bf16.vlgmr.msra.gmra.mrb[80].mxu1 %vm1056_vm2, %v2872_v5 }
0x13c4   : > { %4107 = vmatpush3.bf16.xpose.msra.mxu1 %v3033_v7  ;;  %4108 = vmatprep.mubr.msk.bf16.mxu1 %vm4768_vm0, %v4767_v0 }
0x13c5   : > { %4118 = vmatprep.subr.bf16.mxu1 %v4767_v0 }
0x13c7   : > { %4103 = vmatmul.mubr.msk.bf16.vlgmr.msra.gmra.mrb[56].mxu0 %vm963_vm1, %v2976_v8 }
0x13c8   : > { %4114 = vmatprep.mubr.msk.bf16.mxu0 %vm4768_vm0, %v4767_v0 }
0x13cb   : > { %4109 = vmatmul.mubr.msk.bf16.vlgmr.msra.gmra.mrb[84].mxu1 %vm963_vm1, %v3026_v9 }
0x13cc   : > { %4120 = vmatprep.mubr.msk.bf16.mxu1 %vm4768_vm0, %v4767_v0 }
0x1492   : > { %v2915_v10 = vpop.f32.mrb[52].mxu0 }
0x1493   : > { %v4092_v11 = vpop.f32.mrb[53].mxu0 }
0x1494   : > { %v2918_v13 = vpop.f32.mrb[54].mxu0 }
0x1495   : > { %v4093_v15 = vpop.f32.mrb[55].mxu0 }
0x1496   : > { %v2963_v16 = vpop.f32.mrb[80].mxu1 }
0x1497   : > { %v2969_v17 = vpack.c.bf16 %v2963_v16, %v2915_v10  ;;  %v4098_v18 = vpop.f32.mrb[81].mxu1 }
0x1498   : > { %v2966_v19 = vpop.f32.mrb[82].mxu1 }
0x1499   : > { %v4099_v20 = vpop.f32.mrb[83].mxu1 }
0x149a   : > { %v3019_v21 = vpop.f32.mrb[56].mxu0 }
0x149b   : > { %v4104_v23 = vpop.f32.mrb[57].mxu0  ;;  %v3075_v26 = vsel %vm1056_vm2, %v3019_v21, -inf }
0x149c   : > { %3076 = vmax.xlane.f32.xlu1 %v3075_v26  ;;  %v3022_v30 = vpop.f32.mrb[58].mxu0 }
0x149d   : > { %v4105_v12 = vpop.f32.mrb[59].mxu0 }
0x149e   : > { %v3069_v14 = vpop.f32.mrb[84].mxu1 }
0x149f   : > { %v4110_v31 = vpop.f32.mrb[85].mxu1  ;;  %v3078_v34 = vsel %vm1056_vm2, %v3069_v14, -inf }
0x14a0   : > { %3079 = vmax.xlane.f32.xlu0 %v3078_v34  ;;  %v3072_v35 = vpop.f32.mrb[86].mxu1 }
0x14a1   : > { %v4111_v37 = vpop.f32.mrb[87].mxu1 }
0x14ad   : > { %3099 = vrot.lane.b32.xlu1 %v5481_v52, %s4771_s16 }
0x14b1   : > { %2745 = vrot.lane.b32.xlu1 %v2743_v25, %s4771_s16 }
0x14b5   : > { %2971 = vrot.lane.b32.xlu1 %v2969_v17, %s4770_s28  ;;  %s3360_s28 = scalar_lea.sflag [#allocation5], %s5170_s27 }
0x1529   : > { %v3077_v38 = vpop.xlane.xlu1 %3076 }
0x152a   : > { %v3081_v39 = vsub.f32 %v3019_v21, %v3077_v38 }
0x152c   : > { %v3083_v41 = vmul.f32 1.442695, %v3081_v39 }
0x152d   : > { %v3080_v42 = vpop.xlane.xlu0 %3079  ;;  %v3100_v43 = vpop.permute.xlu1 %3099 }
0x152e   : > { %4402 = vpow2.f32 %v3083_v41  ;;  %v3082_v44 = vsub.f32 %v3069_v14, %v3080_v42  ;;  %v3105_v6 = vsel %vm1084_vm3, %v3100_v43, 0 }
0x152f   : > { %4113 = vmatpush3.bf16.msra.mxu0 %v3105_v6 }
0x1530   : > { %v3085_v22 = vmul.f32 1.442695, %v3082_v44  ;;  %4124 = vmatprep.subr.bf16.mxu0 %v4767_v0  ;;  %v3648_v44 = vld [vmem:[%s5744_s30] ss:$0 sm:$0xff] }
0x1531   : > { %v2746_v52 = vpop.permute.xlu1 %2745 }
0x1532   : > { %4404 = vpow2.f32 %v3085_v22  ;;  %2748 = vst.msk [vmem:[#allocation2] sm:$0xff] %vm1407_vm4, %v2746_v52 }
0x1535   : > { %v2972_v28 = vpop.permute.xlu1 %2971 }
0x1536   : > { %2974 = vst.msk [vmem:[#allocation2] sm:$0xff] %vm1634_vm5, %v2972_v28 }
0x1538   : > { %v4403_v24 = vpop.eup %4402 }
0x1539   : > { %v3087_v25 = vsel %vm1056_vm2, %v4403_v24, 0.0 }
0x153a   : > { %3088 = vadd.xlane.f32.xlu0 %v3087_v25 }
0x153c   : > { %v4405_v32 = vpop.eup %4404 }
0x153d   : > { %v3090_v36 = vsel %vm1056_vm2, %v4405_v32, 0.0 }
0x153e   : > { %3091 = vadd.xlane.f32.xlu0 %v3090_v36 }
0x1554   : > { %3147 = vrot.lane.b32.xlu0 %v5483_v54, %s4771_s16  ;;  %v4338_v54 = vld [vmem:[#allocation17] sm:$0xff]   ;;  %s5743_s16 = sld [smem:[#allocation30_spill]] }
0x155a   : > { %v3647_v42 = vld [vmem:[%s5743_s16] ss:$0 sm:$0xff]  ;;  %s4670_s16 = scalar_lea.vmem %s5648_s10, 256 }
0x155b   : > { %p4671_p12 = scmp.ne.s32.totalorder %s5648_s10, %s4670_s16  ;;  %p4678_p8 = scmp.lt.s32.totalorder %s4676_s29, %s4670_s16 }
0x155d   : > { %p4672_p13 = pnand %p4671_p12, %p5746_p1  ;;  %p4679_p4 = por %p4678_p8, %p4677_p2 }
0x155f   : > { %p4673_p0 = pneg %p4672_p13 }
0x1561   : > { %p4680_p10 = pnand %p4679_p4, %p4673_p0 }
0x15c7   : > { %v3089_v46 = vpop.xlane.xlu0 %3088 }
0x15c8   : > { %4406 = vrcp.f32 %v3089_v46 }
0x15cb   : > { %v3092_v47 = vpop.xlane.xlu0 %3091 }
0x15cc   : > { %4408 = vrcp.f32 %v3092_v47 }
0x15cf   : > { %v3148_v48 = vpop.permute.xlu0 %3147 }
0x15d0   : > { %v3153_v51 = vsel %vm1084_vm3, %v3148_v48, 0 }
0x15d1   : > { %4119 = vmatpush3.bf16.msra.mxu1 %v3153_v51 }
0x15d2   : > { %v4407_v53 = vpop.eup %4406 }
0x15d3   : > { %v3095_v33 = vmul.f32 %v4407_v53, %v4403_v24 }
0x15d5   : > { %v3097_v55 = vpack.c.bf16 %v3095_v33, %v3095_v33 }
0x15d6   : > { %v4409_v40 = vpop.eup %4408 }
0x15d7   : > { %v3096_v45 = vmul.f32 %v4409_v40, %v4405_v32  ;;  %4115 = vmatmul.mubr.msk.bf16.vlgmr.msra.gmra.mrb[60].mxu0 %vm1056_vm2, %v3097_v55 }
0x15d8   : > { %4140 = vmatprep.mubr.msk.bf16.mxu0 %vm4768_vm0, %v4767_v0  ;;  %4125 = vmatpush3.bf16.msra.mxu0 %v4338_v54 }
0x15d9   : > { %v3098_v56 = vpack.c.bf16 %v3096_v45, %v3096_v45  ;;  %4126 = vmatprep.subr.bf16.mxu0 %v4767_v0 }
0x15db   : > { %4121 = vmatmul.mubr.msk.bf16.vlgmr.msra.gmra.mrb[88].mxu1 %vm1056_vm2, %v3098_v56 }
0x15dc   : > { %4127 = vmatpush3.bf16.msra.mxu0 %v4339_v49 }
0x15dd   : > { %4128 = vmatprep.subr.bf16.mxu0 %v4767_v0 }
0x15e0   : > { %4129 = vmatpush3.bf16.msra.mxu0 %v4340_v57 }
0x15e1   : > { %4130 = vmatprep.subr.bf16.mxu0 %v4767_v0 }
0x15e4   : > { %4131 = vmatpush3.bf16.msra.mxu0 %v4341_v58 }
0x15e5   : > { %4132 = vmatprep.subr.bf16.mxu0 %v4767_v0 }
0x15e8   : > { %4133 = vmatpush3.bf16.msra.mxu0 %v4342_v59 }
0x15e9   : > { %4134 = vmatprep.subr.bf16.mxu0 %v4767_v0 }
0x15ec   : > { %4135 = vmatpush3.bf16.msra.mxu0 %v4343_v60 }
0x15ed   : > { %4136 = vmatprep.subr.bf16.mxu0 %v4767_v0 }
0x15f0   : > { %4137 = vmatpush3.bf16.msra.mxu0 %v4344_v61 }
0x15f1   : > { %4138 = vmatprep.subr.bf16.mxu0 %v4767_v0  ;;  %v3638_v0 = vld [vmem:[%s5742_s12] ss:$0 sm:$0xff]  ;;  %s5745_s12 = sld [smem:[#allocation32_spill]] }
0x15f4   : > { %4139 = vmatpush3.bf16.msra.mxu0 %v4345_v62 }
0x16aa   : > { %v3141_v63 = vpop.f32.mrb[60].mxu0 }
0x16ab   : > { %v4116_v1 = vpop.f32.mrb[61].mxu0 }
0x16ac   : > { %v3144_v2 = vpop.f32.mrb[62].mxu0 }
0x16ad   : > { %v4117_v3 = vpop.f32.mrb[63].mxu0 }
0x16ae   : > { %v3189_v4 = vpop.f32.mrb[88].mxu1 }
0x16af   : > { %v3195_v50 = vpack.c.bf16 %v3189_v4, %v3141_v63  ;;  %v4122_v5 = vpop.f32.mrb[89].mxu1 }
0x16b0   : > { %v3192_v7 = vpop.f32.mrb[90].mxu1 }
0x16b1   : > { %v4123_v8 = vpop.f32.mrb[91].mxu1  ;;  %3197 = vrot.lane.b32.xlu1 %v3195_v50, %s4769_s4  ;;  %s5646_s4 = scalar_lea.hbm %s5745_s12, %s3655_s17 }
0x1723   : > { %v3198_v9 = vpop.permute.xlu1 %3197 }
0x1724   : > { %3200 = vst.msk [vmem:[#allocation2] sm:$0xff] %vm1861_vm6, %v3198_v9 }
0x172b   : > { %v3201_v10 = vld [vmem:[#allocation2] sm:$0xff] }
0x172c   : > { %4141 = vmatmul.mubr.bf16.vlgmr.msra.gmra.mrb[64].mxu0 %v3201_v10 }
0x17ff   : > { %v3307_v11 = vpop.f32.mrb[64].mxu0 }
0x1800   : > { %v3308_v13 = vadd.f32 %v3638_v0, %v3307_v11  ;;  %v4142_v15 = vpop.f32.mrb[65].mxu0 }
0x1801   : > { %v3310_v16 = vpop.f32.mrb[66].mxu0 }
0x1802   : > { %v3311_v17 = vadd.f32 %v3638_v0, %v3310_v16  ;;  %v4143_v18 = vpop.f32.mrb[67].mxu0  ;;  %v3314_v19 = vadd.f32 %v3308_v13, %v5435_v27 }
0x1804   : > { %3316 = vadd.xlane.f32.xlu0 %v3314_v19  ;;  %v3315_v20 = vadd.f32 %v3311_v17, %v5438_v29 }
0x1806   : > { %3318 = vadd.xlane.f32.xlu1 %v3315_v20 }
0x1891   : > { %v3317_v21 = vpop.xlane.xlu0 %3316 }
0x1892   : > { %v3321_v23 = vmul.f32 0.0078125, %v3317_v21 }
0x1893   : > { %v3319_v26 = vpop.xlane.xlu1 %3318 }
0x1894   : > { %v3323_v30 = vsub.f32 %v3314_v19, %v3321_v23  ;;  %v3322_v12 = vmul.f32 0.0078125, %v3319_v26 }
0x1896   : > { %v3324_v14 = vsub.f32 %v3315_v20, %v3322_v12  ;;  %v3325_v31 = vmul.f32 %v3323_v30, %v3323_v30 }
0x1898   : > { %3327 = vadd.xlane.f32.xlu0 %v3325_v31  ;;  %v3326_v34 = vmul.f32 %v3324_v14, %v3324_v14 }
0x189c   : > { %3329 = vadd.xlane.f32.xlu0 %v3326_v34 }
0x1925   : > { %v3328_v35 = vpop.xlane.xlu0 %3327 }
0x1926   : > { %v3331_v37 = vmul.f32 0.0078125, %v3328_v35 }
0x1928   : > { %v3333_v38 = vadd.f32 1e-05, %v3331_v37 }
0x1929   : > { %v3330_v27 = vpop.xlane.xlu0 %3329 }
0x192a   : > { %4410 = vrsqrt.f32 %v3333_v38  ;;  %v3332_v39 = vmul.f32 0.0078125, %v3330_v27 }
0x192c   : > { %v3334_v29 = vadd.f32 1e-05, %v3332_v39 }
0x192e   : > { %4412 = vrsqrt.f32 %v3334_v29 }
0x1934   : > { %v4411_v41 = vpop.eup %4410 }
0x1935   : > { %v3337_v43 = vmul.f32 %v4411_v41, %v3323_v30 }
0x1937   : > { %v3346_v6 = vmul.f32 %v3647_v42, %v3337_v43 }
0x1938   : > { %v4413_v22 = vpop.eup %4412 }
0x1939   : > { %v3355_v52 = vadd.f32 %v3648_v44, %v3346_v6  ;;  %v3338_v28 = vmul.f32 %v4413_v22, %v3324_v14 }
0x193b   : > { %v3347_v24 = vmul.f32 %v3647_v42, %v3338_v28  ;;  %3357 = vst [vmem:[%s628_s13] sm:$0xff] %v3355_v52 }
0x193d   : > { %v3356_v25 = vadd.f32 %v3648_v44, %v3347_v24 }
0x193f   : > { %3358 = vst [vmem:[%s628_s13 + $0x8] sm:$0xff] %v3356_v25 }
0x1940   : > { %4683 = shalt.err (!%p4680_p10)
}
0x1941   : > { %s4684_s14 = scalar_lea.hbm %s5646_s4, 256  ;;  %s4688_s13 = scalar_lea.hbm %s5745_s12, 512 }
0x1942   : > { %p4685_p11 = scmp.ne.s32.totalorder %s5646_s4, %s4684_s14  ;;  %p4689_p7 = scmp.lt.u32.totalorder %s5646_s4, %s5745_s12 }
0x1943   : > { %p4690_p6 = scmp.lt.u32.totalorder %s4688_s13, %s4684_s14  ;;  %p4692_p12 = scmp.lt.u32.totalorder %s4684_s14, %s5646_s4 }
0x1944   : > { %p4686_p3 = pnand %p4685_p11, %p5746_p1 }
0x1945   : > { %p4691_p9 = por %p4690_p6, %p4689_p7 }
0x1946   : > { %p4687_p5 = pneg %p4686_p3 }
0x1947   : > { %p4693_p13 = por %p4692_p12, %p4691_p9 }
0x1949   : > { %p4694_p0 = pnand %p4693_p13, %p4687_p5 }
0x194b   : > { %4697 = shalt.err (!%p4694_p0)
}
0x194c   : > { %s4773_s16 = smov 128   ;;  %s4774_s24 = smov 8  }
0x194d   : > { %4178 = dma.vmem_to_hbm [thread:$0]  (%p5746_p1), %s5648_s10, 256, %s5646_s4, %s3360_s28, %s4773_s16, %s4773_s16, %s4774_s24  }
0x194e PF: > { %s3388_s23 = sand.u32 1, %s4740_s18   ;;  %p5747_p2 = scmp.ne.s32.totalorder %s5728_s22, 0 }
0x194f   : > { %p5748_p8 = scmp.ge.s32.totalorder %s4752_s21, 2  ;;  %s3389_s29 = scalar_lea.sflag [#allocation5], %s3388_s23 }
0x1951   : > { %p4210_p4 = pnand %p5748_p8, %p5747_p2 }
0x1953   : > { %4735 = dma.done.wait (!%p4210_p4), %s3389_s29, 256  }
0x1954   : > { %4737 = vsyncadd (!%p4210_p4), %s3389_s29, 4294967040  ;;  %p32_p10 = scmp.ge.s32.totalorder %s5091_s26, 4   ;;  %s5749_s18 = smov %s4744_s19 }
0x1955   : > { %s5750_s19 = smov %s4748_s20  ;;  %s5751_s20 = smov %s5102_s6 }
0x1956   : > { %s5752_s21 = smov %s5091_s26  ;;  %34 = sbr.rel (!%p32_p10) target bundleno = 18 (0x12), region = 157 }
0x195d   :  { %3394 = vsyncpa [#allocation4], 1 }
0x195e   :  { %3396 = vsyncpa [#allocation4 + $0x1], 1 }
0x195f   :  { %3397 = vsyncpa [#allocation7], 1 }
0x1960   :  { %3398 = vsyncpa [#allocation10], 1 }
0x1961   :  { %3399 = vsyncpa [#allocation13], 1 }
0x1962   :  { %3400 = vsyncpa [#allocation16], 1 }
0x1963   :  { %3401 = vsyncpa [#allocation5], 1 }
0x1964   :  { %3403 = vsyncpa [#allocation5 + $0x1], 1 }

</bundles_post_ra>
